<compile_context>
chip_gen: v5e
topology: v5e:2x2
jax: 0.10.0
libtpu: 0.0.40
codegen_flags: <defaults>
</compile_context>

<pallas_src>
import functools

import jax
import jax.numpy as jnp
from jax.experimental import pallas as pl
from jax.experimental.pallas import tpu as pltpu


# ----------------------------------------------------------------------------
# Helpers
# ----------------------------------------------------------------------------
def _round_up(x, m):
    return (x + m - 1) // m * m


def _im2col(xp, kh, kw, stride, Ho, Wo):
    """Gather kh*kw shifted strided views of the spatially-padded input.

    Channel-minor ordering (i, j, cin) matches w.reshape(kh*kw*Cin, Cout).
    """
    cols = []
    for i in range(kh):
        for j in range(kw):
            cols.append(
                xp[:, i:i + (Ho - 1) * stride + 1:stride,
                      j:j + (Wo - 1) * stride + 1:stride, :])
    return jnp.concatenate(cols, axis=-1)  # [B, Ho, Wo, kh*kw*Cin]


# ----------------------------------------------------------------------------
# Pallas kernels
# ----------------------------------------------------------------------------
def _matmul_bias_silu_kernel(a_ref, w_ref, b_ref, o_ref):
    """[TM, Kp] @ [Kp, Cp] + bias, then SiLU. bf16 MXU inputs, f32 accumulate."""
    acc = jnp.dot(a_ref[...], w_ref[...], preferred_element_type=jnp.float32)
    acc = acc + b_ref[...]                                  # bias broadcast [1, Cp]
    # SiLU = x * sigmoid(x); route the reciprocal to the EUP approx path.
    silu = acc * pl.reciprocal(1.0 + jnp.exp(-acc), approx=True)
    o_ref[...] = silu.astype(o_ref.dtype)


def _conv_pool_mlp_kernel(a_ref, wc_ref, bc_ref, w1_ref, b1_ref, w2_ref, b2_ref,
                          o_ref, acc_ref, *, tm, n_valid, inv_count):
    """Fused last conv + SiLU + global average pool + Linear-ReLU-Linear.

    Grid = (B, n_row_tiles). Row sums accumulate in a VMEM f32 scratch across
    the (arbitrary) tile axis; the MLP runs in a pl.when epilogue per sample.
    """
    t = pl.program_id(1)

    @pl.when(t == 0)
    def _init():
        acc_ref[...] = jnp.zeros_like(acc_ref)

    acc = jnp.dot(a_ref[...], wc_ref[...], preferred_element_type=jnp.float32)
    acc = acc + bc_ref[...]
    act = acc * pl.reciprocal(1.0 + jnp.exp(-acc), approx=True)   # SiLU, f32

    # Mask rows that are M-padding (they would contribute SiLU(bias) != 0).
    row = t * tm + jax.lax.broadcasted_iota(jnp.int32, act.shape, 0)
    act = jnp.where(row < n_valid, act, 0.0)

    # Per-tile partial sum, broadcast-added across the 8 scratch sublanes
    # (all rows stay identical; lets the epilogue matmul run lane/sublane dense).
    acc_ref[...] += jnp.sum(act, axis=0, keepdims=True)

    @pl.when(t == pl.num_programs(1) - 1)
    def _finish():
        pooled = (acc_ref[...] * inv_count).astype(jnp.bfloat16)   # (8, Cp)
        h = jnp.dot(pooled, w1_ref[...], preferred_element_type=jnp.float32)
        h = jnp.maximum(h + b1_ref[...], 0.0).astype(jnp.bfloat16)  # ReLU
        out = jnp.dot(h, w2_ref[...], preferred_element_type=jnp.float32)
        o_ref[...] = out + b2_ref[...]                              # (8, Op) f32


# ----------------------------------------------------------------------------
# Wrappers
# ----------------------------------------------------------------------------
_VMEM_LIMIT = 32 * 1024 * 1024   # explicit, safe on v5e/v6e/v7x scoped defaults


def conv_silu(x_nhwc, w, b, stride, tm_max=256):
    """3x3 same-padded strided conv + SiLU. x: [B,H,W,Cin], w: [kh,kw,Cin,Cout]."""
    B, H, W, Cin = x_nhwc.shape
    kh, kw, _, Cout = w.shape
    pad = kh // 2
    Ho = (H + 2 * pad - kh) // stride + 1
    Wo = (W + 2 * pad - kw) // stride + 1

    xp = jnp.pad(x_nhwc.astype(jnp.bfloat16),
                 ((0, 0), (pad, pad), (pad, pad), (0, 0)))
    patches = _im2col(xp, kh, kw, stride, Ho, Wo)          # [B,Ho,Wo,K] bf16

    K = kh * kw * Cin
    M = B * Ho * Wo
    Kp = _round_up(K, 128)                                  # lane-align contraction
    Cp = _round_up(Cout, 128)                               # lane-dense output stores
    TM = min(tm_max, _round_up(M, 16))
    Mp = _round_up(M, TM)

    a = patches.reshape(M, K)
    a = jnp.pad(a, ((0, Mp - M), (0, Kp - K)))
    wm = jnp.pad(w.reshape(K, Cout), ((0, Kp - K), (0, Cp - Cout))).astype(jnp.bfloat16)
    bm = jnp.pad(b.reshape(1, Cout), ((0, 0), (0, Cp - Cout))).astype(jnp.float32)

    grid = (Mp // TM,)
    cost = pl.CostEstimate(
        flops=2 * Mp * Kp * Cp,
        transcendentals=Mp * Cp,
        bytes_accessed=a.size * 2 + wm.size * 2 + bm.size * 4 + Mp * Cp * 2)

    out = pl.pallas_call(
        _matmul_bias_silu_kernel,
        out_shape=jax.ShapeDtypeStruct((Mp, Cp), jnp.bfloat16),
        grid=grid,
        in_specs=[pl.BlockSpec((TM, Kp), lambda i: (i, 0)),
                  pl.BlockSpec((Kp, Cp), lambda i: (0, 0)),
                  pl.BlockSpec((1, Cp), lambda i: (0, 0))],
        out_specs=pl.BlockSpec((TM, Cp), lambda i: (i, 0)),
        compiler_params=pltpu.CompilerParams(
            dimension_semantics=("parallel",),
            vmem_limit_bytes=_VMEM_LIMIT),
        cost_estimate=cost,
    )(a, wm, bm)

    # Slice the valid rows / channels; keep bf16 for the next stage's im2col.
    return out[:M].reshape(B, Ho, Wo, Cp)[..., :Cout]


def conv_pool_project(x_nhwc, wc, bc, w1, b1, w2, b2, stride, out_dim, tm_max=256):
    """Fused last conv+SiLU, global avg pool, and projection head."""
    B, H, W, Cin = x_nhwc.shape
    kh, kw, _, Cout = wc.shape
    pad = kh // 2
    Ho = (H + 2 * pad - kh) // stride + 1
    Wo = (W + 2 * pad - kw) // stride + 1

    xp = jnp.pad(x_nhwc.astype(jnp.bfloat16),
                 ((0, 0), (pad, pad), (pad, pad), (0, 0)))
    patches = _im2col(xp, kh, kw, stride, Ho, Wo)          # [B,Ho,Wo,K] bf16

    K = kh * kw * Cin
    Mps = Ho * Wo                                           # rows per sample
    Kp = _round_up(K, 128)
    Cp = _round_up(Cout, 128)                               # dim_mlp padded
    Hp = _round_up(w1.shape[1], 128)
    Op = _round_up(out_dim, 128)
    TM = min(tm_max, _round_up(Mps, 16))
    Mpp = _round_up(Mps, TM)

    a = patches.reshape(B, Mps, K)
    a = jnp.pad(a, ((0, 0), (0, Mpp - Mps), (0, Kp - K)))
    wcm = jnp.pad(wc.reshape(K, Cout), ((0, Kp - K), (0, Cp - Cout))).astype(jnp.bfloat16)
    bcm = jnp.pad(bc.reshape(1, Cout), ((0, 0), (0, Cp - Cout))).astype(jnp.float32)
    w1m = jnp.pad(w1, ((0, Cp - w1.shape[0]), (0, Hp - w1.shape[1]))).astype(jnp.bfloat16)
    b1m = jnp.pad(b1.reshape(1, -1), ((0, 0), (0, Hp - b1.shape[0]))).astype(jnp.float32)
    w2m = jnp.pad(w2, ((0, Hp - w2.shape[0]), (0, Op - w2.shape[1]))).astype(jnp.bfloat16)
    b2m = jnp.pad(b2.reshape(1, -1), ((0, 0), (0, Op - b2.shape[0]))).astype(jnp.float32)

    n_t = Mpp // TM
    kernel = functools.partial(_conv_pool_mlp_kernel, tm=TM, n_valid=Mps,
                               inv_count=1.0 / float(Mps))
    cost = pl.CostEstimate(
        flops=2 * B * Mpp * Kp * Cp + 2 * B * 8 * (Cp * Hp + Hp * Op),
        transcendentals=B * Mpp * Cp,
        bytes_accessed=(a.size * 2 + (wcm.size + w1m.size + w2m.size) * 2
                        + (bcm.size + b1m.size + b2m.size) * 4 + B * 8 * Op * 4))

    out = pl.pallas_call(
        kernel,
        out_shape=jax.ShapeDtypeStruct((B, 8, Op), jnp.float32),
        grid=(B, n_t),
        in_specs=[pl.BlockSpec((None, TM, Kp), lambda b, t: (b, t, 0)),
                  pl.BlockSpec((Kp, Cp), lambda b, t: (0, 0)),
                  pl.BlockSpec((1, Cp), lambda b, t: (0, 0)),
                  pl.BlockSpec((Cp, Hp), lambda b, t: (0, 0)),
                  pl.BlockSpec((1, Hp), lambda b, t: (0, 0)),
                  pl.BlockSpec((Hp, Op), lambda b, t: (0, 0)),
                  pl.BlockSpec((1, Op), lambda b, t: (0, 0))],
        out_specs=pl.BlockSpec((None, 8, Op), lambda b, t: (b, 0, 0)),
        scratch_shapes=[pltpu.VMEM((8, Cp), jnp.float32)],
        compiler_params=pltpu.CompilerParams(
            dimension_semantics=("parallel", "arbitrary"),
            vmem_limit_bytes=_VMEM_LIMIT),
        cost_estimate=cost,
    )(a, wcm, bcm, w1m, b1m, w2m, b2m)

    return out[:, 0, :out_dim]                              # [B, out_dim] f32


# ----------------------------------------------------------------------------
# Parameters / forward
# ----------------------------------------------------------------------------
def init_params(key, out_dim=32):
    """Deterministic synthetic parameters (stand-in for pretrained YOLOv10s)."""
    chans = [3, 16, 32, 64]          # backbone channel progression
    keys = jax.random.split(key, 8)
    params = {"convs": []}
    for li in range(3):
        cin, cout = chans[li], chans[li + 1]
        w = jax.random.normal(keys[li], (3, 3, cin, cout), jnp.float32)
        w = w * (1.0 / jnp.sqrt(9.0 * cin))
        b = 0.01 * jax.random.normal(keys[3 + li], (cout,), jnp.float32)
        params["convs"].append((w, b))
    dim_mlp = chans[-1]
    params["w1"] = jax.random.normal(keys[6], (dim_mlp, dim_mlp), jnp.float32) / jnp.sqrt(dim_mlp)
    params["b1"] = jnp.zeros((dim_mlp,), jnp.float32)
    params["w2"] = jax.random.normal(keys[7], (dim_mlp, out_dim), jnp.float32) / jnp.sqrt(dim_mlp)
    params["b2"] = jnp.zeros((out_dim,), jnp.float32)
    return params


def yolo_simclr_forward(params, x_nchw, out_dim=32):
    """Forward pass. x_nchw: [B, 3, H, W] float32 (PyTorch layout)."""
    x = jnp.transpose(x_nchw, (0, 2, 3, 1))                 # NCHW -> NHWC
    (w0, b0), (w1c, b1c), (w2c, b2c) = params["convs"]
    x = conv_silu(x, w0, b0, stride=2)                      # stage 1
    x = conv_silu(x, w1c, b1c, stride=2)                    # stage 2
    # stage 3 fused with AdaptiveAvgPool2d((1,1)) + flatten + projection head
    return conv_pool_project(x, w2c, b2c, params["w1"], params["b1"],
                             params["w2"], params["b2"], stride=2, out_dim=out_dim)


if __name__ == "__main__":
    key = jax.random.PRNGKey(0)
    k_x, k_p = jax.random.split(key)
    x = jax.random.normal(k_x, (2, 3, 32, 32), jnp.float32)   # [B, C, H, W]
    params = init_params(k_p, out_dim=32)

    fwd = jax.jit(lambda p, xx: yolo_simclr_forward(p, xx, out_dim=32))
    out = fwd(params, x)
    out = jax.block_until_ready(out)
    assert out.shape == (2, 32), out.shape
    assert jnp.all(jnp.isfinite(out))
    print("KERNEL_OK")
</pallas_src>

<mosaic_0001>
module attributes {stable_mosaic.version = 11 : i64} {
  func.func @_matmul_bias_silu_kernel(%arg0: i32, %arg1: memref<256x128xbf16, #tpu.memory_space<vmem>>, %arg2: memref<128x128xbf16, #tpu.memory_space<vmem>>, %arg3: memref<1x128xf32, #tpu.memory_space<vmem>>, %arg4: memref<256x128xbf16, #tpu.memory_space<vmem>>) attributes {dimension_semantics = [#tpu.dimension_semantics<parallel>], iteration_bounds = array<i64: 2>, scalar_prefetch = 0 : i64, scratch_operands = 0 : i64, tpu.core_type = #tpu.core_type<tc>, window_params = [{transform_indices = @transform_0, window_bounds = array<i64: 256, 128>}, {pipeline_mode = #tpu.pipeline_mode<synchronous>, transform_indices = @transform_1, window_bounds = array<i64: 128, 128>}, {pipeline_mode = #tpu.pipeline_mode<synchronous>, transform_indices = @transform_2, window_bounds = array<i64: 1, 128>}, {transform_indices = @transform_3, window_bounds = array<i64: 256, 128>}]} {
    %c0 = arith.constant 0 : index
    %c0_0 = arith.constant 0 : index
    %0 = vector.load %arg1[%c0, %c0_0] : memref<256x128xbf16, #tpu.memory_space<vmem>>, vector<256x128xbf16>
    %c0_1 = arith.constant 0 : index
    %c0_2 = arith.constant 0 : index
    %1 = vector.load %arg2[%c0_1, %c0_2] : memref<128x128xbf16, #tpu.memory_space<vmem>>, vector<128x128xbf16>
    %cst = arith.constant dense<0.000000e+00> : vector<256x128xf32>
    %2 = tpu.matmul %0, %1, %cst {dimension_numbers = #tpu.dot_dimension_numbers<[1], [0], [0], [1], [0, 0, 1, 1], [], []>} : vector<256x128xbf16>, vector<128x128xbf16>, vector<256x128xf32> -> vector<256x128xf32>
    %c0_3 = arith.constant 0 : index
    %c0_4 = arith.constant 0 : index
    %3 = vector.load %arg3[%c0_3, %c0_4] : memref<1x128xf32, #tpu.memory_space<vmem>>, vector<1x128xf32>
    %4 = vector.broadcast %3 : vector<1x128xf32> to vector<256x128xf32>
    %5 = arith.addf %2, %4 : vector<256x128xf32>
    %cst_5 = arith.constant 0.000000e+00 : f32
    %6 = vector.broadcast %cst_5 : f32 to vector<256x128xf32>
    %7 = arith.subf %6, %5 : vector<256x128xf32>
    %8 = math.exp %7 : vector<256x128xf32>
    %cst_6 = arith.constant 1.000000e+00 : f32
    %9 = vector.broadcast %cst_6 : f32 to vector<256x128xf32>
    %10 = arith.addf %9, %8 : vector<256x128xf32>
    %11 = tpu.reciprocal %10 {approx = true} : vector<256x128xf32> -> vector<256x128xf32>
    %12 = arith.mulf %5, %11 : vector<256x128xf32>
    %13 = arith.truncf %12 : vector<256x128xf32> to vector<256x128xbf16>
    %c0_7 = arith.constant 0 : index
    %c0_8 = arith.constant 0 : index
    %14 = vector.load %arg4[%c0_7, %c0_8] : memref<256x128xbf16, #tpu.memory_space<vmem>>, vector<256x128xbf16>
    tpu.vector_store %arg4[%c0_7, %c0_8], %13 {strides = array<i32>} : memref<256x128xbf16, #tpu.memory_space<vmem>>, vector<256x128xbf16>,
    return
  }
  func.func @transform_0(%arg0: i32) -> (i32, i32) {
    %c0_i32 = arith.constant 0 : i32
    %c0_i32_0 = arith.constant 0 : i32
    return %arg0, %c0_i32 : i32, i32
  }
  func.func @transform_1(%arg0: i32) -> (i32, i32) {
    %c0_i32 = arith.constant 0 : i32
    %c0_i32_0 = arith.constant 0 : i32
    %c0_i32_1 = arith.constant 0 : i32
    return %c0_i32, %c0_i32_0 : i32, i32
  }
  func.func @transform_2(%arg0: i32) -> (i32, i32) {
    %c0_i32 = arith.constant 0 : i32
    %c0_i32_0 = arith.constant 0 : i32
    %c0_i32_1 = arith.constant 0 : i32
    return %c0_i32, %c0_i32_0 : i32, i32
  }
  func.func @transform_3(%arg0: i32) -> (i32, i32) {
    %c0_i32 = arith.constant 0 : i32
    %c0_i32_0 = arith.constant 0 : i32
    return %arg0, %c0_i32 : i32, i32
  }
}

module attributes {stable_mosaic.version = 11 : i64} {
  func.func @_matmul_bias_silu_kernel(%arg0: i32, %arg1: memref<128x256xbf16, #tpu.memory_space<vmem>>, %arg2: memref<256x128xbf16, #tpu.memory_space<vmem>>, %arg3: memref<1x128xf32, #tpu.memory_space<vmem>>, %arg4: memref<128x128xbf16, #tpu.memory_space<vmem>>) attributes {dimension_semantics = [#tpu.dimension_semantics<parallel>], iteration_bounds = array<i64: 1>, scalar_prefetch = 0 : i64, scratch_operands = 0 : i64, tpu.core_type = #tpu.core_type<tc>, window_params = [{transform_indices = @transform_0, window_bounds = array<i64: 128, 256>}, {pipeline_mode = #tpu.pipeline_mode<synchronous>, transform_indices = @transform_1, window_bounds = array<i64: 256, 128>}, {pipeline_mode = #tpu.pipeline_mode<synchronous>, transform_indices = @transform_2, window_bounds = array<i64: 1, 128>}, {transform_indices = @transform_3, window_bounds = array<i64: 128, 128>}]} {
    %c0 = arith.constant 0 : index
    %c0_0 = arith.constant 0 : index
    %0 = vector.load %arg1[%c0, %c0_0] : memref<128x256xbf16, #tpu.memory_space<vmem>>, vector<128x256xbf16>
    %c0_1 = arith.constant 0 : index
    %c0_2 = arith.constant 0 : index
    %1 = vector.load %arg2[%c0_1, %c0_2] : memref<256x128xbf16, #tpu.memory_space<vmem>>, vector<256x128xbf16>
    %cst = arith.constant dense<0.000000e+00> : vector<128x128xf32>
    %2 = tpu.matmul %0, %1, %cst {dimension_numbers = #tpu.dot_dimension_numbers<[1], [0], [0], [1], [0, 0, 1, 1], [], []>} : vector<128x256xbf16>, vector<256x128xbf16>, vector<128x128xf32> -> vector<128x128xf32>
    %c0_3 = arith.constant 0 : index
    %c0_4 = arith.constant 0 : index
    %3 = vector.load %arg3[%c0_3, %c0_4] : memref<1x128xf32, #tpu.memory_space<vmem>>, vector<1x128xf32>
    %4 = vector.broadcast %3 : vector<1x128xf32> to vector<128x128xf32>
    %5 = arith.addf %2, %4 : vector<128x128xf32>
    %cst_5 = arith.constant 0.000000e+00 : f32
    %6 = vector.broadcast %cst_5 : f32 to vector<128x128xf32>
    %7 = arith.subf %6, %5 : vector<128x128xf32>
    %8 = math.exp %7 : vector<128x128xf32>
    %cst_6 = arith.constant 1.000000e+00 : f32
    %9 = vector.broadcast %cst_6 : f32 to vector<128x128xf32>
    %10 = arith.addf %9, %8 : vector<128x128xf32>
    %11 = tpu.reciprocal %10 {approx = true} : vector<128x128xf32> -> vector<128x128xf32>
    %12 = arith.mulf %5, %11 : vector<128x128xf32>
    %13 = arith.truncf %12 : vector<128x128xf32> to vector<128x128xbf16>
    %c0_7 = arith.constant 0 : index
    %c0_8 = arith.constant 0 : index
    %14 = vector.load %arg4[%c0_7, %c0_8] : memref<128x128xbf16, #tpu.memory_space<vmem>>, vector<128x128xbf16>
    tpu.vector_store %arg4[%c0_7, %c0_8], %13 {strides = array<i32>} : memref<128x128xbf16, #tpu.memory_space<vmem>>, vector<128x128xbf16>,
    return
  }
  func.func @transform_0(%arg0: i32) -> (i32, i32) {
    %c0_i32 = arith.constant 0 : i32
    %c0_i32_0 = arith.constant 0 : i32
    return %arg0, %c0_i32 : i32, i32
  }
  func.func @transform_1(%arg0: i32) -> (i32, i32) {
    %c0_i32 = arith.constant 0 : i32
    %c0_i32_0 = arith.constant 0 : i32
    %c0_i32_1 = arith.constant 0 : i32
    return %c0_i32, %c0_i32_0 : i32, i32
  }
  func.func @transform_2(%arg0: i32) -> (i32, i32) {
    %c0_i32 = arith.constant 0 : i32
    %c0_i32_0 = arith.constant 0 : i32
    %c0_i32_1 = arith.constant 0 : i32
    return %c0_i32, %c0_i32_0 : i32, i32
  }
  func.func @transform_3(%arg0: i32) -> (i32, i32) {
    %c0_i32 = arith.constant 0 : i32
    %c0_i32_0 = arith.constant 0 : i32
    return %arg0, %c0_i32 : i32, i32
  }
}

module attributes {stable_mosaic.version = 11 : i64} {
  func.func @_conv_pool_mlp_kernel(%arg0: i32, %arg1: i32, %arg2: memref<1x16x384xbf16, #tpu.memory_space<vmem>>, %arg3: memref<384x128xbf16, #tpu.memory_space<vmem>>, %arg4: memref<1x128xf32, #tpu.memory_space<vmem>>, %arg5: memref<128x128xbf16, #tpu.memory_space<vmem>>, %arg6: memref<1x128xf32, #tpu.memory_space<vmem>>, %arg7: memref<128x128xbf16, #tpu.memory_space<vmem>>, %arg8: memref<1x128xf32, #tpu.memory_space<vmem>>, %arg9: memref<1x8x128xf32, #tpu.memory_space<vmem>>, %arg10: memref<8x128xf32, #tpu.memory_space<vmem>>) attributes {dimension_semantics = [#tpu.dimension_semantics<parallel>, #tpu.dimension_semantics<arbitrary>], iteration_bounds = array<i64: 2, 1>, scalar_prefetch = 0 : i64, scratch_operands = 1 : i64, tpu.core_type = #tpu.core_type<tc>, window_params = [{transform_indices = @transform_0, window_bounds = array<i64: 1, 16, 384>}, {pipeline_mode = #tpu.pipeline_mode<synchronous>, transform_indices = @transform_1, window_bounds = array<i64: 384, 128>}, {pipeline_mode = #tpu.pipeline_mode<synchronous>, transform_indices = @transform_2, window_bounds = array<i64: 1, 128>}, {pipeline_mode = #tpu.pipeline_mode<synchronous>, transform_indices = @transform_3, window_bounds = array<i64: 128, 128>}, {pipeline_mode = #tpu.pipeline_mode<synchronous>, transform_indices = @transform_4, window_bounds = array<i64: 1, 128>}, {pipeline_mode = #tpu.pipeline_mode<synchronous>, transform_indices = @transform_5, window_bounds = array<i64: 128, 128>}, {pipeline_mode = #tpu.pipeline_mode<synchronous>, transform_indices = @transform_6, window_bounds = array<i64: 1, 128>}, {transform_indices = @transform_7, window_bounds = array<i64: 1, 8, 128>}]} {
    %c0_i32 = arith.constant 0 : i32
    %0 = arith.cmpi eq, %arg1, %c0_i32 : i32
    %1 = arith.extui %0 : i1 to i32
    %c0_i32_0 = arith.constant 0 : i32
    %2 = arith.cmpi ne, %1, %c0_i32_0 : i32
    scf.if %2 {
      %cst_18 = arith.constant 0.000000e+00 : f32
      %34 = vector.broadcast %cst_18 : f32 to vector<8x128xf32>
      %c0_19 = arith.constant 0 : index
      %c0_20 = arith.constant 0 : index
      %35 = vector.load %arg10[%c0_19, %c0_20] : memref<8x128xf32, #tpu.memory_space<vmem>>, vector<8x128xf32>
      tpu.vector_store %arg10[%c0_19, %c0_20], %34 {strides = array<i32>} : memref<8x128xf32, #tpu.memory_space<vmem>>, vector<8x128xf32>,
    } else {
    }
    %c0 = arith.constant 0 : index
    %c0_1 = arith.constant 0 : index
    %c0_2 = arith.constant 0 : index
    %3 = vector.load %arg2[%c0, %c0_1, %c0_2] : memref<1x16x384xbf16, #tpu.memory_space<vmem>>, vector<1x16x384xbf16>
    %4 = vector.shape_cast %3 : vector<1x16x384xbf16> to vector<16x384xbf16>
    %c0_3 = arith.constant 0 : index
    %c0_4 = arith.constant 0 : index
    %5 = vector.load %arg3[%c0_3, %c0_4] : memref<384x128xbf16, #tpu.memory_space<vmem>>, vector<384x128xbf16>
    %cst = arith.constant dense<0.000000e+00> : vector<16x128xf32>
    %6 = tpu.matmul %4, %5, %cst {dimension_numbers = #tpu.dot_dimension_numbers<[1], [0], [0], [1], [0, 0, 1, 1], [], []>} : vector<16x384xbf16>, vector<384x128xbf16>, vector<16x128xf32> -> vector<16x128xf32>
    %c0_5 = arith.constant 0 : index
    %c0_6 = arith.constant 0 : index
    %7 = vector.load %arg4[%c0_5, %c0_6] : memref<1x128xf32, #tpu.memory_space<vmem>>, vector<1x128xf32>
    %8 = vector.broadcast %7 : vector<1x128xf32> to vector<16x128xf32>
    %9 = arith.addf %6, %8 : vector<16x128xf32>
    %cst_7 = arith.constant 0.000000e+00 : f32
    %10 = vector.broadcast %cst_7 : f32 to vector<16x128xf32>
    %11 = arith.subf %10, %9 : vector<16x128xf32>
    %12 = math.exp %11 : vector<16x128xf32>
    %cst_8 = arith.constant 1.000000e+00 : f32
    %13 = vector.broadcast %cst_8 : f32 to vector<16x128xf32>
    %14 = arith.addf %13, %12 : vector<16x128xf32>
    %15 = tpu.reciprocal %14 {approx = true} : vector<16x128xf32> -> vector<16x128xf32>
    %16 = arith.mulf %9, %15 : vector<16x128xf32>
    %c16_i32 = arith.constant 16 : i32
    %17 = arith.muli %arg1, %c16_i32 : i32
    %18 = tpu.iota {dimensions = array<i32: 0>} : vector<16x128xi32>
    %19 = vector.broadcast %17 : i32 to vector<16x128xi32>
    %20 = arith.addi %19, %18 : vector<16x128xi32>
    %c16_i32_9 = arith.constant 16 : i32
    %21 = vector.broadcast %c16_i32_9 : i32 to vector<16x128xi32>
    %22 = arith.cmpi slt, %20, %21 : vector<16x128xi32>
    %cst_10 = arith.constant 0.000000e+00 : f32
    %23 = vector.broadcast %cst_10 : f32 to vector<16x128xf32>
    %24 = arith.select %22, %16, %23 : vector<16x128xi1>, vector<16x128xf32>
    %c0_11 = arith.constant 0 : index
    %c0_12 = arith.constant 0 : index
    %25 = vector.load %arg10[%c0_11, %c0_12] : memref<8x128xf32, #tpu.memory_space<vmem>>, vector<8x128xf32>
    %cst_13 = arith.constant dense<0.000000e+00> : vector<128xf32>
    %26 = vector.multi_reduction <add>, %24, %cst_13 [0] : vector<16x128xf32> to vector<128xf32>
    %27 = vector.shape_cast %26 : vector<128xf32> to vector<1x128xf32>
    %28 = vector.broadcast %27 : vector<1x128xf32> to vector<8x128xf32>
    %29 = arith.addf %25, %28 : vector<8x128xf32>
    %c0_14 = arith.constant 0 : index
    %c0_15 = arith.constant 0 : index
    %30 = vector.load %arg10[%c0_14, %c0_15] : memref<8x128xf32, #tpu.memory_space<vmem>>, vector<8x128xf32>
    tpu.vector_store %arg10[%c0_14, %c0_15], %29 {strides = array<i32>} : memref<8x128xf32, #tpu.memory_space<vmem>>, vector<8x128xf32>,
    %c0_i32_16 = arith.constant 0 : i32
    %31 = arith.cmpi eq, %arg1, %c0_i32_16 : i32
    %32 = arith.extui %31 : i1 to i32
    %c0_i32_17 = arith.constant 0 : i32
    %33 = arith.cmpi ne, %32, %c0_i32_17 : i32
    scf.if %33 {
      %c0_18 = arith.constant 0 : index
      %c0_19 = arith.constant 0 : index
      %34 = vector.load %arg10[%c0_18, %c0_19] : memref<8x128xf32, #tpu.memory_space<vmem>>, vector<8x128xf32>
      %cst_20 = arith.constant 6.250000e-02 : f32
      %35 = vector.broadcast %cst_20 : f32 to vector<8x128xf32>
      %36 = arith.mulf %34, %35 : vector<8x128xf32>
      %37 = arith.truncf %36 : vector<8x128xf32> to vector<8x128xbf16>
      %c0_21 = arith.constant 0 : index
      %c0_22 = arith.constant 0 : index
      %38 = vector.load %arg5[%c0_21, %c0_22] : memref<128x128xbf16, #tpu.memory_space<vmem>>, vector<128x128xbf16>
      %cst_23 = arith.constant dense<0.000000e+00> : vector<8x128xf32>
      %39 = tpu.matmul %37, %38, %cst_23 {dimension_numbers = #tpu.dot_dimension_numbers<[1], [0], [0], [1], [0, 0, 1, 1], [], []>} : vector<8x128xbf16>, vector<128x128xbf16>, vector<8x128xf32> -> vector<8x128xf32>
      %c0_24 = arith.constant 0 : index
      %c0_25 = arith.constant 0 : index
      %40 = vector.load %arg6[%c0_24, %c0_25] : memref<1x128xf32, #tpu.memory_space<vmem>>, vector<1x128xf32>
      %41 = vector.broadcast %40 : vector<1x128xf32> to vector<8x128xf32>
      %42 = arith.addf %39, %41 : vector<8x128xf32>
      %cst_26 = arith.constant 0.000000e+00 : f32
      %43 = vector.broadcast %cst_26 : f32 to vector<8x128xf32>
      %44 = arith.maximumf %42, %43 : vector<8x128xf32>
      %45 = arith.truncf %44 : vector<8x128xf32> to vector<8x128xbf16>
      %c0_27 = arith.constant 0 : index
      %c0_28 = arith.constant 0 : index
      %46 = vector.load %arg7[%c0_27, %c0_28] : memref<128x128xbf16, #tpu.memory_space<vmem>>, vector<128x128xbf16>
      %cst_29 = arith.constant dense<0.000000e+00> : vector<8x128xf32>
      %47 = tpu.matmul %45, %46, %cst_29 {dimension_numbers = #tpu.dot_dimension_numbers<[1], [0], [0], [1], [0, 0, 1, 1], [], []>} : vector<8x128xbf16>, vector<128x128xbf16>, vector<8x128xf32> -> vector<8x128xf32>
      %c0_30 = arith.constant 0 : index
      %c0_31 = arith.constant 0 : index
      %48 = vector.load %arg8[%c0_30, %c0_31] : memref<1x128xf32, #tpu.memory_space<vmem>>, vector<1x128xf32>
      %49 = vector.broadcast %48 : vector<1x128xf32> to vector<8x128xf32>
      %50 = arith.addf %47, %49 : vector<8x128xf32>
      %c0_32 = arith.constant 0 : index
      %c0_33 = arith.constant 0 : index
      %c0_34 = arith.constant 0 : index
      %51 = vector.load %arg9[%c0_32, %c0_33, %c0_34] : memref<1x8x128xf32, #tpu.memory_space<vmem>>, vector<1x8x128xf32>
      %52 = vector.shape_cast %51 : vector<1x8x128xf32> to vector<8x128xf32>
      %53 = vector.shape_cast %50 : vector<8x128xf32> to vector<1x8x128xf32>
      tpu.vector_store %arg9[%c0_32, %c0_33, %c0_34], %53 {strides = array<i32>} : memref<1x8x128xf32, #tpu.memory_space<vmem>>, vector<1x8x128xf32>,
    } else {
    }
    return
  }
  func.func @transform_0(%arg0: i32, %arg1: i32) -> (i32, i32, i32) {
    %c0_i32 = arith.constant 0 : i32
    %c0_i32_0 = arith.constant 0 : i32
    return %arg0, %arg1, %c0_i32 : i32, i32, i32
  }
  func.func @transform_1(%arg0: i32, %arg1: i32) -> (i32, i32) {
    %c0_i32 = arith.constant 0 : i32
    %c0_i32_0 = arith.constant 0 : i32
    %c0_i32_1 = arith.constant 0 : i32
    return %c0_i32, %c0_i32_0 : i32, i32
  }
  func.func @transform_2(%arg0: i32, %arg1: i32) -> (i32, i32) {
    %c0_i32 = arith.constant 0 : i32
    %c0_i32_0 = arith.constant 0 : i32
    %c0_i32_1 = arith.constant 0 : i32
    return %c0_i32, %c0_i32_0 : i32, i32
  }
  func.func @transform_3(%arg0: i32, %arg1: i32) -> (i32, i32) {
    %c0_i32 = arith.constant 0 : i32
    %c0_i32_0 = arith.constant 0 : i32
    %c0_i32_1 = arith.constant 0 : i32
    return %c0_i32, %c0_i32_0 : i32, i32
  }
  func.func @transform_4(%arg0: i32, %arg1: i32) -> (i32, i32) {
    %c0_i32 = arith.constant 0 : i32
    %c0_i32_0 = arith.constant 0 : i32
    %c0_i32_1 = arith.constant 0 : i32
    return %c0_i32, %c0_i32_0 : i32, i32
  }
  func.func @transform_5(%arg0: i32, %arg1: i32) -> (i32, i32) {
    %c0_i32 = arith.constant 0 : i32
    %c0_i32_0 = arith.constant 0 : i32
    %c0_i32_1 = arith.constant 0 : i32
    return %c0_i32, %c0_i32_0 : i32, i32
  }
  func.func @transform_6(%arg0: i32, %arg1: i32) -> (i32, i32) {
    %c0_i32 = arith.constant 0 : i32
    %c0_i32_0 = arith.constant 0 : i32
    %c0_i32_1 = arith.constant 0 : i32
    return %c0_i32, %c0_i32_0 : i32, i32
  }
  func.func @transform_7(%arg0: i32, %arg1: i32) -> (i32, i32, i32) {
    %c0_i32 = arith.constant 0 : i32
    %c0_i32_0 = arith.constant 0 : i32
    %c0_i32_1 = arith.constant 0 : i32
    return %arg0, %c0_i32, %c0_i32_0 : i32, i32, i32
  }
}

</mosaic_0001>

<bundles_post_ra>
// kernel: _lambda_.3
= control target key start
LH: loop header
LB: loop body
LE: loop exit
PB: predicated region body
PF: predicated region fallthrough
CT: control target
= control target key end

     0   :  { %s1186_s12 = smov 0   ;;  %s1438_s0 = inlined_call_operand.vmem [shape: bf16[512,128], index: 0, kind: input, shape index: {}]   ;;  %s1439_s1 = inlined_call_operand.vmem [shape: bf16[128,128], index: 1, kind: input, shape index: {}]   ;;  %s1440_s2 = inlined_call_operand.vmem [shape: f32[1,128], index: 2, kind: input, shape index: {}]   ;;  %s1441_s3 = inlined_call_operand.vmem [shape: bf16[512,128], index: 3, kind: output, shape index: {}]  }
   0x1 LB: > { %s771_s13 = sadd.s32 4294967295, %s1164_s12   ;;  %p775_p0 = scmp.ge.s32.totalorder %s1164_s12, 1  ;;  %s1164_s12 = sphi %s1186_s12, %s13_s12  }
   0x2   : > { %p138_p1 = scmp.lt.s32.totalorder %s1164_s12, 3 }
   0x4   : > { %p139_p2 = pnand %p775_p0, %p138_p1 }
   0x5   : > { %s776_s22 = sshll.u32 (!%p139_p2), %s771_s13, 5 }
   0x6   : > { %142 = sbr.rel (%p139_p2) target bundleno = 266 (0x10a), region = 32  ;;  %p163_p3 = scmp.lt.s32.totalorder (!%p139_p2), %s776_s22, 63 }
   0xb   : > { %v901_v0 = vld [vmem:[%s1439_s1 + $0x38] sm:$0xff]  ;;  %v900_v1 = vld [vmem:[%s1439_s1 + $0x30] sm:$0xff]  ;;  %v899_v2 = vld [vmem:[%s1439_s1 + $0x28] sm:$0xff]  ;;  %s1443_s22 = smov (!%p163_p3, %s776_s22), 63 }
   0xc   : > { %370 = vmatpush.bf16.msra.mxu0 %v901_v0  ;;  %997 = vmatpush.bf16.msra.mxu1 %v901_v0  ;;  %v898_v3 = vld [vmem:[%s1439_s1 + $0x20] sm:$0xff]  ;;  %v897_v4 = vld [vmem:[%s1439_s1 + $0x18] sm:$0xff]  ;;  %v896_v5 = vld [vmem:[%s1439_s1 + $0x10] sm:$0xff]  ;;  %s777_s29 = sshll.u32 %s1443_s22, 2 }
   0xd   : > { %998 = vmatpush.bf16.msra.mxu2 %v901_v0  ;;  %999 = vmatpush.bf16.msra.mxu3 %v901_v0  ;;  %v895_v6 = vld [vmem:[%s1439_s1 + $0x8] sm:$0xff]  ;;  %v894_v7 = vld [vmem:[%s1439_s1] sm:$0xff]  ;;  %s1226_s7 = scalar_lea.vmem %s1438_s0, %s777_s29  ;;  %s1326_s13 = scalar_lea.vmem %s1441_s3, %s777_s29 }
   0xe   : > { %v878_v8 = vld [vmem:[%s1226_s7] sm:$0xff]  ;;  %v879_v12 = vld [vmem:[%s1226_s7 + $0x8] sm:$0xff]  ;;  %v880_v16 = vld [vmem:[%s1226_s7 + $0x10] sm:$0xff] }
   0xf   : > { %v882_v9 = vld [vmem:[%s1226_s7 + $0x20] sm:$0xff]  ;;  %v883_v13 = vld [vmem:[%s1226_s7 + $0x28] sm:$0xff]  ;;  %v884_v17 = vld [vmem:[%s1226_s7 + $0x30] sm:$0xff] }
  0x10   : > { %371 = vmatpush.bf16.msra.mxu0 %v900_v1  ;;  %1000 = vmatpush.bf16.msra.mxu1 %v900_v1  ;;  %v886_v10 = vld [vmem:[%s1226_s7 + $0x40] sm:$0xff]  ;;  %v887_v14 = vld [vmem:[%s1226_s7 + $0x48] sm:$0xff]  ;;  %v888_v18 = vld [vmem:[%s1226_s7 + $0x50] sm:$0xff] }
  0x11   : > { %1001 = vmatpush.bf16.msra.mxu2 %v900_v1  ;;  %1002 = vmatpush.bf16.msra.mxu3 %v900_v1  ;;  %v890_v11 = vld [vmem:[%s1226_s7 + $0x60] sm:$0xff]  ;;  %v891_v15 = vld [vmem:[%s1226_s7 + $0x68] sm:$0xff]  ;;  %v892_v19 = vld [vmem:[%s1226_s7 + $0x70] sm:$0xff] }
  0x12   : > { %v881_v20 = vld [vmem:[%s1226_s7 + $0x18] sm:$0xff]  ;;  %v1247_v24 = vld [vmem:[%s1440_s2] ss:$0 sm:$0xff] }
  0x13   : > { %v885_v21 = vld [vmem:[%s1226_s7 + $0x38] sm:$0xff] }
  0x14   : > { %372 = vmatpush.bf16.msra.mxu0 %v899_v2  ;;  %1003 = vmatpush.bf16.msra.mxu1 %v899_v2  ;;  %v889_v22 = vld [vmem:[%s1226_s7 + $0x58] sm:$0xff] }
  0x15   : > { %1004 = vmatpush.bf16.msra.mxu2 %v899_v2  ;;  %1005 = vmatpush.bf16.msra.mxu3 %v899_v2  ;;  %v893_v23 = vld [vmem:[%s1226_s7 + $0x78] sm:$0xff] }
  0x18   : > { %373 = vmatpush.bf16.msra.mxu0 %v898_v3  ;;  %1006 = vmatpush.bf16.msra.mxu1 %v898_v3 }
  0x19   : > { %1007 = vmatpush.bf16.msra.mxu2 %v898_v3  ;;  %1008 = vmatpush.bf16.msra.mxu3 %v898_v3 }
  0x1c   : > { %374 = vmatpush.bf16.msra.mxu0 %v897_v4  ;;  %1009 = vmatpush.bf16.msra.mxu1 %v897_v4 }
  0x1d   : > { %1010 = vmatpush.bf16.msra.mxu2 %v897_v4  ;;  %1011 = vmatpush.bf16.msra.mxu3 %v897_v4 }
  0x20   : > { %375 = vmatpush.bf16.msra.mxu0 %v896_v5  ;;  %1012 = vmatpush.bf16.msra.mxu1 %v896_v5 }
  0x21   : > { %1013 = vmatpush.bf16.msra.mxu2 %v896_v5  ;;  %1014 = vmatpush.bf16.msra.mxu3 %v896_v5 }
  0x24   : > { %376 = vmatpush.bf16.msra.mxu0 %v895_v6  ;;  %1015 = vmatpush.bf16.msra.mxu1 %v895_v6 }
  0x25   : > { %1016 = vmatpush.bf16.msra.mxu2 %v895_v6  ;;  %1017 = vmatpush.bf16.msra.mxu3 %v895_v6 }
  0x28   : > { %377 = vmatpush.bf16.msra.mxu0 %v894_v7  ;;  %1018 = vmatpush.bf16.msra.mxu1 %v894_v7 }
  0x29   : > { %1019 = vmatpush.bf16.msra.mxu2 %v894_v7  ;;  %1020 = vmatpush.bf16.msra.mxu3 %v894_v7 }
  0x2b   : > { %378 = vmatmul.bf16.vlgmr.msra.gmra.mxu0 %v878_v8  ;;  %398 = vmatmul.bf16.vlgmr.msra.gmra.mxu1 %v882_v9 }
  0x2c   : > { %418 = vmatmul.bf16.vlgmr.msra.gmra.mxu2 %v886_v10  ;;  %438 = vmatmul.bf16.vlgmr.msra.gmra.mxu3 %v890_v11 }
  0x3b   : > { %383 = vmatmul.bf16.gmra.mxu0 %v879_v12  ;;  %403 = vmatmul.bf16.gmra.mxu1 %v883_v13 }
  0x3c   : > { %423 = vmatmul.bf16.gmra.mxu2 %v887_v14  ;;  %443 = vmatmul.bf16.gmra.mxu3 %v891_v15 }
  0x4b   : > { %388 = vmatmul.bf16.gmra.mxu0 %v880_v16  ;;  %408 = vmatmul.bf16.gmra.mxu1 %v884_v17 }
  0x4c   : > { %428 = vmatmul.bf16.gmra.mxu2 %v888_v18  ;;  %448 = vmatmul.bf16.gmra.mxu3 %v892_v19 }
  0x5b   : > { %393 = vmatmul.bf16.gmra.mxu0 %v881_v20  ;;  %413 = vmatmul.bf16.gmra.mxu1 %v885_v21 }
  0x5c   : > { %433 = vmatmul.bf16.gmra.mxu2 %v889_v22  ;;  %453 = vmatmul.bf16.gmra.mxu3 %v893_v23 }
  0xa8   : > { %v379_v25 = vpop.f32.mrf.mxu0  ;;  %v399_v26 = vpop.f32.mrf.mxu1 }
  0xa9   : > { %v1250_v27 = vadd.f32 %v1247_v24, %v379_v25  ;;  %v1253_v28 = vadd.f32 %v1247_v24, %v399_v26 }
  0xab   : > { %v459_v29 = vsub.f32 0.0, %v1250_v27  ;;  %v467_v30 = vsub.f32 0.0, %v1253_v28 }
  0xad   : > { %v491_v31 = vmul.f32 1.442695, %v459_v29  ;;  %v507_v32 = vmul.f32 1.442695, %v467_v30 }
  0xaf   : > { %1030 = vpow2.f32 %v491_v31  ;;  %v419_v33 = vpop.f32.mrf.mxu2  ;;  %v439_v34 = vpop.f32.mrf.mxu3 }
  0xb0   : > { %1032 = vpow2.f32 %v507_v32  ;;  %v1258_v35 = vadd.f32 %v1247_v24, %v419_v33  ;;  %v1261_v36 = vadd.f32 %v1247_v24, %v439_v34  ;;  %v381_v37 = vpop.f32.mrf.mxu0  ;;  %v401_v38 = vpop.f32.mrf.mxu1 }
  0xb1   : > { %v1264_v39 = vadd.f32 %v1247_v24, %v381_v37  ;;  %v1267_v40 = vadd.f32 %v1247_v24, %v401_v38 }
  0xb2   : > { %v475_v41 = vsub.f32 0.0, %v1258_v35  ;;  %v483_v42 = vsub.f32 0.0, %v1261_v36 }
  0xb3   : > { %v460_v43 = vsub.f32 0.0, %v1264_v39  ;;  %v468_v44 = vsub.f32 0.0, %v1267_v40 }
  0xb4   : > { %v523_v45 = vmul.f32 1.442695, %v475_v41  ;;  %v539_v46 = vmul.f32 1.442695, %v483_v42 }
  0xb5   : > { %v1031_v47 = vpop.eup %1030  ;;  %v493_v49 = vmul.f32 1.442695, %v460_v43  ;;  %v509_v50 = vmul.f32 1.442695, %v468_v44 }
  0xb6   : > { %v1033_v48 = vpop.eup %1032  ;;  %1034 = vpow2.f32 %v523_v45  ;;  %v555_v53 = vadd.f32 1.0, %v1031_v47 }
  0xb7   : > { %1036 = vpow2.f32 %v539_v46  ;;  %v421_v51 = vpop.f32.mrf.mxu2  ;;  %v441_v52 = vpop.f32.mrf.mxu3  ;;  %v563_v58 = vadd.f32 1.0, %v1033_v48 }
  0xb8   : > { %v1274_v54 = vadd.f32 %v1247_v24, %v421_v51  ;;  %v1277_v55 = vadd.f32 %v1247_v24, %v441_v52  ;;  %v384_v56 = vpop.f32.mrf.mxu0  ;;  %v404_v57 = vpop.f32.mrf.mxu1  ;;  %1038 = vpow2.f32 %v493_v49 }
  0xb9   : > { %v1280_v59 = vadd.f32 %v1247_v24, %v384_v56  ;;  %v1283_v60 = vadd.f32 %v1247_v24, %v404_v57  ;;  %1040 = vpow2.f32 %v509_v50 }
  0xba   : > { %v476_v61 = vsub.f32 0.0, %v1274_v54  ;;  %v484_v62 = vsub.f32 0.0, %v1277_v55  ;;  %1042 = vrcp.f32 %v555_v53 }
  0xbb   : > { %v461_v63 = vsub.f32 0.0, %v1280_v59  ;;  %v469_v2 = vsub.f32 0.0, %v1283_v60  ;;  %1044 = vrcp.f32 %v563_v58 }
  0xbc   : > { %v1035_v0 = vpop.eup %1034  ;;  %v525_v1 = vmul.f32 1.442695, %v476_v61  ;;  %v541_v5 = vmul.f32 1.442695, %v484_v62 }
  0xbd   : > { %v1037_v3 = vpop.eup %1036  ;;  %v571_v4 = vadd.f32 1.0, %v1035_v0  ;;  %v495_v7 = vmul.f32 1.442695, %v461_v63  ;;  %v511_v11 = vmul.f32 1.442695, %v469_v2 }
  0xbe   : > { %v579_v6 = vadd.f32 1.0, %v1037_v3  ;;  %1046 = vpow2.f32 %v525_v1  ;;  %v1039_v10 = vpop.eup %1038 }
  0xbf   : > { %1048 = vrcp.f32 %v571_v4  ;;  %v424_v8 = vpop.f32.mrf.mxu2  ;;  %v444_v9 = vpop.f32.mrf.mxu3  ;;  %v556_v17 = vadd.f32 1.0, %v1039_v10 }
  0xc0   : > { %1050 = vrcp.f32 %v579_v6  ;;  %v1290_v12 = vadd.f32 %v1247_v24, %v424_v8  ;;  %v1293_v13 = vadd.f32 %v1247_v24, %v444_v9  ;;  %v386_v14 = vpop.f32.mrf.mxu0  ;;  %v406_v15 = vpop.f32.mrf.mxu1 }
  0xc1   : > { %v1041_v16 = vpop.eup %1040  ;;  %1052 = vpow2.f32 %v541_v5  ;;  %v1296_v18 = vadd.f32 %v1247_v24, %v386_v14  ;;  %v1299_v19 = vadd.f32 %v1247_v24, %v406_v15 }
  0xc2   : > { %v1043_v20 = vpop.eup %1042  ;;  %v564_v21 = vadd.f32 1.0, %v1041_v16  ;;  %1054 = vpow2.f32 %v495_v7  ;;  %v477_v22 = vsub.f32 0.0, %v1290_v12  ;;  %v485_v23 = vsub.f32 0.0, %v1293_v13 }
  0xc3   : > { %v1045_v25 = vpop.eup %1044  ;;  %1056 = vrcp.f32 %v556_v17  ;;  %v462_v26 = vsub.f32 0.0, %v1296_v18  ;;  %v470_v29 = vsub.f32 0.0, %v1299_v19  ;;  %v619_v52 = vmul.f32 %v1043_v20, %v1250_v27 }
  0xc4   : > { %v1047_v30 = vpop.eup %1046  ;;  %1058 = vrcp.f32 %v564_v21  ;;  %v527_v31 = vmul.f32 1.442695, %v477_v22  ;;  %v543_v32 = vmul.f32 1.442695, %v485_v23  ;;  %v627_v0 = vmul.f32 %v1045_v25, %v1253_v28 }
  0xc5   : > { %v1049_v33 = vpop.eup %1048  ;;  %v572_v34 = vadd.f32 1.0, %v1047_v30  ;;  %1060 = vpow2.f32 %v511_v11  ;;  %v497_v37 = vmul.f32 1.442695, %v462_v26  ;;  %v513_v42 = vmul.f32 1.442695, %v470_v29 }
  0xc6   : > { %v1051_v38 = vpop.eup %1050  ;;  %1062 = vpow2.f32 %v527_v31  ;;  %v635_v6 = vmul.f32 %v1049_v33, %v1258_v35 }
  0xc7   : > { %v1053_v41 = vpop.eup %1052  ;;  %1064 = vrcp.f32 %v572_v34  ;;  %v426_v43 = vpop.f32.mrf.mxu2  ;;  %v643_v10 = vmul.f32 %v1051_v38, %v1261_v36 }
  0xc8   : > { %v446_v44 = vpop.f32.mrf.mxu3  ;;  %v1055_v45 = vpop.eup %1054  ;;  %v580_v46 = vadd.f32 1.0, %v1053_v41  ;;  %1066 = vpow2.f32 %v543_v32  ;;  %v1306_v47 = vadd.f32 %v1247_v24, %v426_v43 }
  0xc9   : > { %v1309_v48 = vadd.f32 %v1247_v24, %v446_v44  ;;  %v389_v49 = vpop.f32.mrf.mxu0  ;;  %v409_v50 = vpop.f32.mrf.mxu1  ;;  %v557_v53 = vadd.f32 1.0, %v1055_v45  ;;  %1068 = vpow2.f32 %v497_v37 }
  0xca   : > { %v1057_v51 = vpop.eup %1056  ;;  %v1313_v56 = vadd.f32 %v1247_v24, %v389_v49  ;;  %1070 = vrcp.f32 %v580_v46  ;;  %v478_v61 = vsub.f32 0.0, %v1306_v47  ;;  %v1318_v62 = vadd.f32 %v1247_v24, %v409_v50 }
  0xcb   : > { %v1059_v57 = vpop.eup %1058  ;;  %v620_v58 = vmul.f32 %v1057_v51, %v1264_v39  ;;  %v486_v39 = vsub.f32 0.0, %v1309_v48  ;;  %1072 = vpow2.f32 %v513_v42 }
  0xcc   : > { %v1061_v63 = vpop.eup %1060  ;;  %v628_v27 = vmul.f32 %v1059_v57, %v1267_v40  ;;  %v463_v1 = vsub.f32 0.0, %v1313_v56  ;;  %v529_v5 = vmul.f32 1.442695, %v478_v61  ;;  %1074 = vrcp.f32 %v557_v53 }
  0xcd   : > { %v1063_v2 = vpop.eup %1062  ;;  %v905_v3 = vpack.c.bf16 %v620_v58, %v619_v52  ;;  %v565_v4 = vadd.f32 1.0, %v1061_v63  ;;  %v471_v11 = vsub.f32 0.0, %v1318_v62  ;;  %v545_v16 = vmul.f32 1.442695, %v486_v39 }
  0xce   : > { %v1065_v28 = vpop.eup %1064  ;;  %v925_v7 = vpack.c.bf16 %v628_v27, %v627_v0  ;;  %v573_v8 = vadd.f32 1.0, %v1063_v2  ;;  %v499_v17 = vmul.f32 1.442695, %v463_v1 }
  0xcf   : > { %v1067_v9 = vpop.eup %1066  ;;  %906 = vst [vmem:[%s1326_s13] sm:$0xff] %v905_v3   ;;  %v636_v40 = vmul.f32 %v1065_v28, %v1274_v54  ;;  %1076 = vrcp.f32 %v565_v4  ;;  %v429_v35 = vpop.f32.mrf.mxu2  ;;  %v515_v32 = vmul.f32 1.442695, %v471_v11 }
  0xd0   : > { %v1069_v14 = vpop.eup %1068  ;;  %985 = vst [vmem:[%s1326_s13 + $0x20] sm:$0xff] %v925_v7   ;;  %1078 = vrcp.f32 %v573_v8  ;;  %v581_v15 = vadd.f32 1.0, %v1067_v9  ;;  %v449_v20 = vpop.f32.mrf.mxu3  ;;  %v1338_v36 = vadd.f32 %v1247_v24, %v429_v35 }
  0xd1   : > { %v1071_v21 = vpop.eup %1070  ;;  %v945_v22 = vpack.c.bf16 %v636_v40, %v635_v6  ;;  %v558_v23 = vadd.f32 1.0, %v1069_v14  ;;  %1080 = vpow2.f32 %v529_v5  ;;  %v391_v54 = vpop.f32.mrf.mxu0  ;;  %v1342_v29 = vadd.f32 %v1247_v24, %v449_v20 }
  0xd2   : > { %v411_v25 = vpop.f32.mrf.mxu1  ;;  %v644_v26 = vmul.f32 %v1071_v21, %v1277_v55  ;;  %1082 = vrcp.f32 %v581_v15  ;;  %v1345_v30 = vadd.f32 %v1247_v24, %v391_v54  ;;  %v1073_v31 = vpop.eup %1072  ;;  %v479_v33 = vsub.f32 0.0, %v1338_v36 }
  0xd3   : > { %989 = vst [vmem:[%s1326_s13 + $0x40] sm:$0xff] %v945_v22   ;;  %1084 = vrcp.f32 %v558_v23  ;;  %v1350_v34 = vadd.f32 %v1247_v24, %v411_v25  ;;  %v1075_v37 = vpop.eup %1074  ;;  %v566_v55 = vadd.f32 1.0, %v1073_v31  ;;  %v487_v41 = vsub.f32 0.0, %v1342_v29 }
  0xd4   : > { %v965_v38 = vpack.c.bf16 %v644_v26, %v643_v10  ;;  %1086 = vpow2.f32 %v545_v16  ;;  %v531_v43 = vmul.f32 1.442695, %v479_v33  ;;  %v464_v44 = vsub.f32 0.0, %v1345_v30 }
  0xd5   : > { %v1077_v42 = vpop.eup %1076  ;;  %1088 = vpow2.f32 %v499_v17  ;;  %v472_v45 = vsub.f32 0.0, %v1350_v34  ;;  %v547_v49 = vmul.f32 1.442695, %v487_v41  ;;  %v621_v0 = vmul.f32 %v1075_v37, %v1280_v59 }
  0xd6   : > { %v1079_v46 = vpop.eup %1078  ;;  %993 = vst [vmem:[%s1326_s13 + $0x60] sm:$0xff] %v965_v38   ;;  %1090 = vrcp.f32 %v566_v55  ;;  %v501_v51 = vmul.f32 1.442695, %v464_v44  ;;  %v629_v14 = vmul.f32 %v1077_v42, %v1283_v60 }
  0xd7   : > { %v1081_v50 = vpop.eup %1080  ;;  %1092 = vpow2.f32 %v515_v32  ;;  %v517_v57 = vmul.f32 1.442695, %v472_v45  ;;  %v431_v58 = vpop.f32.mrf.mxu2  ;;  %v637_v26 = vmul.f32 %v1079_v46, %v1290_v12 }
  0xd8   : > { %v1356_v52 = vpop.eup %1082  ;;  %v574_v53 = vadd.f32 1.0, %v1081_v50  ;;  %1094 = vpow2.f32 %v531_v43  ;;  %v451_v61 = vpop.f32.mrf.mxu3  ;;  %v1360_v27 = vadd.f32 %v1247_v24, %v431_v58 }
  0xd9   : > { %v1085_v63 = vpop.eup %1084  ;;  %1096 = vpow2.f32 %v547_v49  ;;  %v1363_v39 = vadd.f32 %v1247_v24, %v451_v61  ;;  %v394_v1 = vpop.f32.mrf.mxu0 }
  0xda   : > { %v414_v2 = vpop.f32.mrf.mxu1  ;;  %v1087_v3 = vpop.eup %1086  ;;  %v622_v4 = vmul.f32 %v1085_v63, %v1296_v18  ;;  %1098 = vrcp.f32 %v574_v53  ;;  %v1367_v5 = vadd.f32 %v1247_v24, %v394_v1  ;;  %v480_v7 = vsub.f32 0.0, %v1360_v27 }
  0xdb   : > { %v1370_v28 = vadd.f32 %v1247_v24, %v414_v2  ;;  %v1089_v59 = vpop.eup %1088  ;;  %v582_v6 = vadd.f32 1.0, %v1087_v3  ;;  %1100 = vpow2.f32 %v501_v51  ;;  %v488_v8 = vsub.f32 0.0, %v1363_v39 }
  0xdc   : > { %v1091_v9 = vpop.eup %1090  ;;  %v910_v10 = vpack.c.bf16 %v622_v4, %v621_v0  ;;  %v559_v40 = vadd.f32 1.0, %v1089_v59  ;;  %1102 = vpow2.f32 %v517_v57  ;;  %v465_v18 = vsub.f32 0.0, %v1367_v5 }
  0xdd   : > { %v1093_v11 = vpop.eup %1092  ;;  %v630_v15 = vmul.f32 %v1091_v9, %v1299_v19  ;;  %1104 = vrcp.f32 %v582_v6  ;;  %v533_v16 = vmul.f32 1.442695, %v480_v7  ;;  %v473_v20 = vsub.f32 0.0, %v1370_v28 }
  0xde   : > { %v1095_v17 = vpop.eup %1094  ;;  %982 = vst [vmem:[%s1326_s13 + $0x8] sm:$0xff] %v910_v10   ;;  %1106 = vrcp.f32 %v559_v40  ;;  %v567_v35 = vadd.f32 1.0, %v1093_v11  ;;  %v549_v54 = vmul.f32 1.442695, %v488_v8  ;;  %v503_v60 = vmul.f32 1.442695, %v465_v18 }
  0xdf   : > { %v1097_v21 = vpop.eup %1096  ;;  %v930_v22 = vpack.c.bf16 %v630_v15, %v629_v14  ;;  %v575_v23 = vadd.f32 1.0, %v1095_v17  ;;  %1108 = vpow2.f32 %v533_v16  ;;  %v434_v19 = vpop.f32.mrf.mxu2  ;;  %v519_v37 = vmul.f32 1.442695, %v473_v20 }
  0xe0   : > { %v1099_v25 = vpop.eup %1098  ;;  %1110 = vrcp.f32 %v567_v35  ;;  %v454_v31 = vpop.f32.mrf.mxu3  ;;  %v1383_v38 = vadd.f32 %v1247_v24, %v434_v19  ;;  %v645_v53 = vmul.f32 %v1356_v52, %v1293_v13  ;;  %v583_v63 = vadd.f32 1.0, %v1097_v21 }
  0xe1   : > { %v1101_v32 = vpop.eup %1100  ;;  %986 = vst [vmem:[%s1326_s13 + $0x28] sm:$0xff] %v930_v22   ;;  %v638_v33 = vmul.f32 %v1099_v25, %v1306_v47  ;;  %1112 = vrcp.f32 %v575_v23  ;;  %v396_v55 = vpop.f32.mrf.mxu0  ;;  %v1386_v12 = vadd.f32 %v1247_v24, %v454_v31 }
  0xe2   : > { %v416_v41 = vpop.f32.mrf.mxu1  ;;  %v1103_v42 = vpop.eup %1102  ;;  %v560_v43 = vadd.f32 1.0, %v1101_v32  ;;  %v1389_v44 = vadd.f32 %v1247_v24, %v396_v55  ;;  %1114 = vpow2.f32 %v549_v54  ;;  %v481_v50 = vsub.f32 0.0, %v1383_v38 }
  0xe3   : > { %v1392_v45 = vadd.f32 %v1247_v24, %v416_v41  ;;  %v1105_v47 = vpop.eup %1104  ;;  %v950_v46 = vpack.c.bf16 %v638_v33, %v637_v26  ;;  %v568_v49 = vadd.f32 1.0, %v1103_v42  ;;  %v489_v13 = vsub.f32 0.0, %v1386_v12 }
  0xe4   : > { %v1107_v51 = vpop.eup %1106  ;;  %v646_v57 = vmul.f32 %v1105_v47, %v1309_v48  ;;  %1116 = vrcp.f32 %v560_v43  ;;  %v466_v58 = vsub.f32 0.0, %v1389_v44  ;;  %v535_v4 = vmul.f32 1.442695, %v481_v50 }
  0xe5   : > { %v1109_v61 = vpop.eup %1108  ;;  %990 = vst [vmem:[%s1326_s13 + $0x48] sm:$0xff] %v950_v46   ;;  %1118 = vrcp.f32 %v568_v49  ;;  %v474_v0 = vsub.f32 0.0, %v1392_v45  ;;  %v623_v18 = vmul.f32 %v1107_v51, %v1313_v56  ;;  %v551_v16 = vmul.f32 1.442695, %v489_v13 }
  0xe6   : > { %v1111_v1 = vpop.eup %1110  ;;  %v970_v2 = vpack.c.bf16 %v646_v57, %v645_v53  ;;  %v576_v3 = vadd.f32 1.0, %v1109_v61  ;;  %1120 = vpow2.f32 %v503_v60  ;;  %v505_v48 = vmul.f32 1.442695, %v466_v58 }
  0xe7   : > { %v1113_v59 = vpop.eup %1112  ;;  %1122 = vpow2.f32 %v519_v37  ;;  %v436_v52 = vpop.f32.mrf.mxu2  ;;  %v521_v8 = vmul.f32 1.442695, %v474_v0  ;;  %v631_v20 = vmul.f32 %v1111_v1, %v1318_v62 }
  0xe8   : > { %994 = vst [vmem:[%s1326_s13 + $0x68] sm:$0xff] %v970_v2   ;;  %1124 = vrcp.f32 %v576_v3  ;;  %v456_v6 = vpop.f32.mrf.mxu3  ;;  %v1115_v7 = vpop.eup %1114  ;;  %v1404_v9 = vadd.f32 %v1247_v24, %v436_v52  ;;  %v639_v60 = vmul.f32 %v1113_v59, %v1338_v36 }
  0xe9   : > { %1126 = vrcp.f32 %v583_v63  ;;  %v1407_v10 = vadd.f32 %v1247_v24, %v456_v6  ;;  %v584_v11 = vadd.f32 1.0, %v1115_v7 }
  0xea   : > { %v1117_v40 = vpop.eup %1116  ;;  %1128 = vpow2.f32 %v535_v4  ;;  %v482_v17 = vsub.f32 0.0, %v1404_v9 }
  0xeb   : > { %v1119_v14 = vpop.eup %1118  ;;  %v624_v15 = vmul.f32 %v1117_v40, %v1345_v30  ;;  %1130 = vpow2.f32 %v505_v48  ;;  %v490_v23 = vsub.f32 0.0, %v1407_v10 }
  0xec   : > { %v1121_v35 = vpop.eup %1120  ;;  %v632_v21 = vmul.f32 %v1119_v14, %v1350_v34  ;;  %1132 = vrcp.f32 %v584_v11  ;;  %v537_v56 = vmul.f32 1.442695, %v482_v17 }
  0xed   : > { %v1123_v24 = vpop.eup %1122  ;;  %v915_v22 = vpack.c.bf16 %v624_v15, %v623_v18  ;;  %1134 = vpow2.f32 %v521_v8  ;;  %v561_v25 = vadd.f32 1.0, %v1121_v35  ;;  %v553_v33 = vmul.f32 1.442695, %v490_v23 }
  0xee   : > { %v1125_v54 = vpop.eup %1124  ;;  %v935_v30 = vpack.c.bf16 %v632_v21, %v631_v20  ;;  %v569_v19 = vadd.f32 1.0, %v1123_v24  ;;  %1136 = vpow2.f32 %v551_v16 }
  0xef   : > { %v1127_v26 = vpop.eup %1126  ;;  %983 = vst [vmem:[%s1326_s13 + $0x10] sm:$0xff] %v915_v22   ;;  %v640_v62 = vmul.f32 %v1125_v54, %v1360_v27  ;;  %1138 = vpow2.f32 %v537_v56 }
  0xf0   : > { %v1129_v34 = vpop.eup %1128  ;;  %987 = vst [vmem:[%s1326_s13 + $0x30] sm:$0xff] %v935_v30   ;;  %1140 = vrcp.f32 %v561_v25  ;;  %v647_v42 = vmul.f32 %v1127_v26, %v1342_v29 }
  0xf1   : > { %v1131_v31 = vpop.eup %1130  ;;  %v955_v32 = vpack.c.bf16 %v640_v62, %v639_v60  ;;  %1142 = vrcp.f32 %v569_v19  ;;  %v577_v27 = vadd.f32 1.0, %v1129_v34 }
  0xf2   : > { %v1133_v37 = vpop.eup %1132  ;;  %v562_v55 = vadd.f32 1.0, %v1131_v31 }
  0xf3   : > { %v1135_v41 = vpop.eup %1134  ;;  %991 = vst [vmem:[%s1326_s13 + $0x50] sm:$0xff] %v955_v32   ;;  %v648_v36 = vmul.f32 %v1133_v37, %v1363_v39 }
  0xf4   : > { %1144 = vrcp.f32 %v562_v55  ;;  %v570_v43 = vadd.f32 1.0, %v1135_v41  ;;  %v1137_v47 = vpop.eup %1136 }
  0xf5   : > { %v975_v46 = vpack.c.bf16 %v648_v36, %v647_v42  ;;  %1146 = vpow2.f32 %v553_v33  ;;  %v1139_v49 = vpop.eup %1138  ;;  %v585_v51 = vadd.f32 1.0, %v1137_v47 }
  0xf6   : > { %1148 = vrcp.f32 %v570_v43  ;;  %v1141_v50 = vpop.eup %1140  ;;  %v578_v53 = vadd.f32 1.0, %v1139_v49 }
  0xf7   : > { %995 = vst [vmem:[%s1326_s13 + $0x70] sm:$0xff] %v975_v46   ;;  %1150 = vrcp.f32 %v577_v27  ;;  %v1143_v57 = vpop.eup %1142  ;;  %v625_v58 = vmul.f32 %v1141_v50, %v1367_v5 }
  0xf8   : > { %1152 = vrcp.f32 %v578_v53  ;;  %v633_v1 = vmul.f32 %v1143_v57, %v1370_v28 }
  0xf9   : > { %1154 = vrcp.f32 %v585_v51 }
  0xfa   : > { %v1145_v29 = vpop.eup %1144 }
  0xfb   : > { %v1147_v39 = vpop.eup %1146  ;;  %v626_v61 = vmul.f32 %v1145_v29, %v1389_v44 }
  0xfc   : > { %v1149_v63 = vpop.eup %1148  ;;  %v586_v0 = vadd.f32 1.0, %v1147_v39 }
  0xfd   : > { %v920_v2 = vpack.c.bf16 %v626_v61, %v625_v58  ;;  %v634_v3 = vmul.f32 %v1149_v63, %v1392_v45  ;;  %v1151_v4 = vpop.eup %1150 }
  0xfe   : > { %1156 = vrcp.f32 %v586_v0  ;;  %v1153_v13 = vpop.eup %1152  ;;  %v641_v48 = vmul.f32 %v1151_v4, %v1383_v38 }
  0xff   : > { %984 = vst [vmem:[%s1326_s13 + $0x18] sm:$0xff] %v920_v2   ;;  %v940_v59 = vpack.c.bf16 %v634_v3, %v633_v1  ;;  %v642_v5 = vmul.f32 %v1153_v13, %v1404_v9  ;;  %v1155_v44 = vpop.eup %1154 }
 0x100   : > { %v649_v7 = vmul.f32 %v1155_v44, %v1386_v12 }
 0x101   : > { %988 = vst [vmem:[%s1326_s13 + $0x38] sm:$0xff] %v940_v59   ;;  %v960_v52 = vpack.c.bf16 %v642_v5, %v641_v48 }
 0x103   : > { %992 = vst [vmem:[%s1326_s13 + $0x58] sm:$0xff] %v960_v52  }
 0x104   : > { %v1157_v6 = vpop.eup %1156 }
 0x105   : > { %v650_v28 = vmul.f32 %v1157_v6, %v1407_v10 }
 0x107   : > { %v980_v45 = vpack.c.bf16 %v650_v28, %v649_v7 }
 0x109   : > { %996 = vst [vmem:[%s1326_s13 + $0x78] sm:$0xff] %v980_v45  }
 0x10a PF: > { %s13_s12 = sadd.s32 1, %s1164_s12  }
 0x10b   : > { %p10_p4 = scmp.ge.s32.totalorder %s13_s12, 4  }
 0x10d   :  { %12 = sbr.rel (!%p10_p4) target bundleno = 1 (0x1), region = 62 }

// kernel: _lambda_.4
= control target key start
LH: loop header
LB: loop body
LE: loop exit
PB: predicated region body
PF: predicated region fallthrough
CT: control target
= control target key end

     0   :  { %s1009_s1 = inlined_call_operand.vmem [shape: bf16[256,128], index: 1, kind: input, shape index: {}]   ;;  %s1010_s2 = inlined_call_operand.vmem [shape: f32[1,128], index: 2, kind: input, shape index: {}]   ;;  %s1011_s0 = inlined_call_operand.vmem [shape: bf16[128,256], index: 0, kind: input, shape index: {}]   ;;  %s1012_s3 = inlined_call_operand.vmem [shape: bf16[128,128], index: 3, kind: output, shape index: {}]  }
   0x1   :  { %v623_v0 = vld [vmem:[%s1009_s1 + $0x38] sm:$0xff]  ;;  %v622_v2 = vld [vmem:[%s1009_s1 + $0x30] sm:$0xff]  ;;  %v621_v4 = vld [vmem:[%s1009_s1 + $0x28] sm:$0xff] }
   0x2   :  { %v631_v1 = vld [vmem:[%s1009_s1 + $0x78] sm:$0xff]  ;;  %242 = vmatpush.bf16.msra.mxu0 %v623_v0  ;;  %679 = vmatpush.bf16.msra.mxu2 %v623_v0  ;;  %v630_v3 = vld [vmem:[%s1009_s1 + $0x70] sm:$0xff]  ;;  %v629_v5 = vld [vmem:[%s1009_s1 + $0x68] sm:$0xff] }
   0x3   :  { %291 = vmatpush.bf16.msra.mxu1 %v631_v1  ;;  %687 = vmatpush.bf16.msra.mxu3 %v631_v1  ;;  %v620_v6 = vld [vmem:[%s1009_s1 + $0x20] sm:$0xff]  ;;  %v619_v8 = vld [vmem:[%s1009_s1 + $0x18] sm:$0xff]  ;;  %v618_v10 = vld [vmem:[%s1009_s1 + $0x10] sm:$0xff] }
   0x4   :  { %v628_v7 = vld [vmem:[%s1009_s1 + $0x60] sm:$0xff]  ;;  %v627_v9 = vld [vmem:[%s1009_s1 + $0x58] sm:$0xff]  ;;  %v626_v11 = vld [vmem:[%s1009_s1 + $0x50] sm:$0xff] }
   0x5   :  { %v617_v12 = vld [vmem:[%s1009_s1 + $0x8] sm:$0xff]  ;;  %v616_v14 = vld [vmem:[%s1009_s1] sm:$0xff]  ;;  %v482_v28 = vld [vmem:[%s1011_s0 + $0x10] sm:$0xf] }
   0x6   :  { %243 = vmatpush.bf16.msra.mxu0 %v622_v2  ;;  %680 = vmatpush.bf16.msra.mxu2 %v622_v2  ;;  %v625_v13 = vld [vmem:[%s1009_s1 + $0x48] sm:$0xff]  ;;  %v624_v15 = vld [vmem:[%s1009_s1 + $0x40] sm:$0xff]  ;;  %v603_v29 = vld [vmem:[%s1011_s0 + $0x14] sm:$0xf0] }
   0x7   :  { %292 = vmatpush.bf16.msra.mxu1 %v630_v3  ;;  %688 = vmatpush.bf16.msra.mxu3 %v630_v3  ;;  %v474_v16 = vld [vmem:[%s1011_s0] sm:$0xf]  ;;  %v601_v17 = vld [vmem:[%s1011_s0 + $0x4] sm:$0xf0]  ;;  %v600_v20 = vld [vmem:[%s1011_s0 + $0x4] sm:$0xf]  ;;  %v483_v36 = vor.u32 %v603_v29, %v482_v28 }
   0x8   :  { %v506_v18 = vld [vmem:[%s1011_s0 + $0x40] sm:$0xf]  ;;  %v609_v19 = vld [vmem:[%s1011_s0 + $0x44] sm:$0xf0]  ;;  %v476_v21 = vld [vmem:[%s1011_s0 + $0x8] sm:$0xf0]  ;;  %v475_v24 = vor.u32 %v601_v17, %v474_v16 }
   0x9   :  { %v608_v22 = vld [vmem:[%s1011_s0 + $0x44] sm:$0xf]  ;;  %v508_v23 = vld [vmem:[%s1011_s0 + $0x48] sm:$0xf0]  ;;  %v507_v25 = vor.u32 %v609_v19, %v506_v18  ;;  %v479_v26 = vor.u32 %v600_v20, %v476_v21  ;;  %v514_v30 = vld [vmem:[%s1011_s0 + $0x50] sm:$0xf] }
   0xa   :  { %244 = vmatpush.bf16.msra.mxu0 %v621_v4  ;;  %681 = vmatpush.bf16.msra.mxu2 %v621_v4  ;;  %v511_v27 = vor.u32 %v608_v22, %v508_v23  ;;  %v611_v31 = vld [vmem:[%s1011_s0 + $0x54] sm:$0xf0]  ;;  %v602_v32 = vld [vmem:[%s1011_s0 + $0x14] sm:$0xf]  ;;  %v484_v33 = vld [vmem:[%s1011_s0 + $0x18] sm:$0xf0] }
   0xb   :  { %293 = vmatpush.bf16.msra.mxu1 %v629_v5  ;;  %689 = vmatpush.bf16.msra.mxu3 %v629_v5  ;;  %v610_v34 = vld [vmem:[%s1011_s0 + $0x54] sm:$0xf]  ;;  %v516_v35 = vld [vmem:[%s1011_s0 + $0x58] sm:$0xf0]  ;;  %v515_v37 = vor.u32 %v611_v31, %v514_v30  ;;  %v487_v38 = vor.u32 %v602_v32, %v484_v33  ;;  %v490_v40 = vld [vmem:[%s1011_s0 + $0x20] sm:$0xf] }
   0xc   :  { %v519_v39 = vor.u32 %v610_v34, %v516_v35  ;;  %v605_v41 = vld [vmem:[%s1011_s0 + $0x24] sm:$0xf0]  ;;  %v522_v42 = vld [vmem:[%s1011_s0 + $0x60] sm:$0xf]  ;;  %v604_v44 = vld [vmem:[%s1011_s0 + $0x24] sm:$0xf] }
   0xd   :  { %v613_v43 = vld [vmem:[%s1011_s0 + $0x64] sm:$0xf0]  ;;  %v492_v45 = vld [vmem:[%s1011_s0 + $0x28] sm:$0xf0]  ;;  %v612_v46 = vld [vmem:[%s1011_s0 + $0x64] sm:$0xf]  ;;  %v491_v48 = vor.u32 %v605_v41, %v490_v40 }
   0xe   :  { %245 = vmatpush.bf16.msra.mxu0 %v620_v6  ;;  %682 = vmatpush.bf16.msra.mxu2 %v620_v6  ;;  %v524_v47 = vld [vmem:[%s1011_s0 + $0x68] sm:$0xf0]  ;;  %v523_v49 = vor.u32 %v613_v43, %v522_v42  ;;  %v495_v50 = vor.u32 %v604_v44, %v492_v45  ;;  %v498_v52 = vld [vmem:[%s1011_s0 + $0x30] sm:$0xf]  ;;  %v607_v53 = vld [vmem:[%s1011_s0 + $0x34] sm:$0xf0] }
   0xf   :  { %294 = vmatpush.bf16.msra.mxu1 %v628_v7  ;;  %690 = vmatpush.bf16.msra.mxu3 %v628_v7  ;;  %v527_v51 = vor.u32 %v612_v46, %v524_v47  ;;  %v530_v54 = vld [vmem:[%s1011_s0 + $0x70] sm:$0xf]  ;;  %v615_v55 = vld [vmem:[%s1011_s0 + $0x74] sm:$0xf0]  ;;  %v606_v56 = vld [vmem:[%s1011_s0 + $0x34] sm:$0xf]  ;;  %v499_v60 = vor.u32 %v607_v53, %v498_v52 }
  0x10   :  { %v500_v57 = vld [vmem:[%s1011_s0 + $0x38] sm:$0xf0]  ;;  %v614_v58 = vld [vmem:[%s1011_s0 + $0x74] sm:$0xf]  ;;  %v531_v61 = vor.u32 %v615_v55, %v530_v54  ;;  %v927_v0 = vld [vmem:[%s1010_s2] ss:$0 sm:$0xff] }
  0x11   :  { %v532_v59 = vld [vmem:[%s1011_s0 + $0x78] sm:$0xf0]  ;;  %v503_v62 = vor.u32 %v606_v56, %v500_v57 }
  0x12   :  { %246 = vmatpush.bf16.msra.mxu0 %v619_v8  ;;  %683 = vmatpush.bf16.msra.mxu2 %v619_v8  ;;  %v535_v63 = vor.u32 %v614_v58, %v532_v59 }
  0x13   :  { %295 = vmatpush.bf16.msra.mxu1 %v627_v9  ;;  %691 = vmatpush.bf16.msra.mxu3 %v627_v9 }
  0x16   :  { %247 = vmatpush.bf16.msra.mxu0 %v618_v10  ;;  %684 = vmatpush.bf16.msra.mxu2 %v618_v10 }
  0x17   :  { %296 = vmatpush.bf16.msra.mxu1 %v626_v11  ;;  %692 = vmatpush.bf16.msra.mxu3 %v626_v11 }
  0x1a   :  { %248 = vmatpush.bf16.msra.mxu0 %v617_v12  ;;  %685 = vmatpush.bf16.msra.mxu2 %v617_v12 }
  0x1b   :  { %297 = vmatpush.bf16.msra.mxu1 %v625_v13  ;;  %693 = vmatpush.bf16.msra.mxu3 %v625_v13 }
  0x1e   :  { %249 = vmatpush.bf16.msra.mxu0 %v616_v14  ;;  %686 = vmatpush.bf16.msra.mxu2 %v616_v14 }
  0x1f   :  { %298 = vmatpush.bf16.msra.mxu1 %v624_v15  ;;  %694 = vmatpush.bf16.msra.mxu3 %v624_v15 }
  0x21   :  { %250 = vmatmul.bf16.vlgmr.msra.gmra.mxu0 %v475_v24  ;;  %270 = vmatmul.bf16.vlgmr.msra.gmra.mxu2 %v507_v25 }
  0x22   :  { %299 = vmatmul.bf16.vlgmr.msra.gmra.mxu1 %v479_v26  ;;  %319 = vmatmul.bf16.vlgmr.msra.gmra.mxu3 %v511_v27 }
  0x31   :  { %255 = vmatmul.bf16.gmra.mxu0 %v483_v36  ;;  %275 = vmatmul.bf16.gmra.mxu2 %v515_v37 }
  0x32   :  { %304 = vmatmul.bf16.gmra.mxu1 %v487_v38  ;;  %324 = vmatmul.bf16.gmra.mxu3 %v519_v39 }
  0x41   :  { %260 = vmatmul.bf16.gmra.mxu0 %v491_v48  ;;  %280 = vmatmul.bf16.gmra.mxu2 %v523_v49 }
  0x42   :  { %309 = vmatmul.bf16.gmra.mxu1 %v495_v50  ;;  %329 = vmatmul.bf16.gmra.mxu3 %v527_v51 }
  0x51   :  { %265 = vmatmul.bf16.gmra.mxu0 %v499_v60  ;;  %285 = vmatmul.bf16.gmra.mxu2 %v531_v61 }
  0x52   :  { %314 = vmatmul.bf16.gmra.mxu1 %v503_v62  ;;  %334 = vmatmul.bf16.gmra.mxu3 %v535_v63 }
  0x9e   :  { %v251_v1 = vpop.f32.mrf.mxu0 }
  0x9f   :  { %v252_v2 = vadd.f32 %v927_v0, %v251_v1  ;;  %v300_v3 = vpop.f32.mrf.mxu1 }
  0xa1   :  { %v301_v4 = vadd.f32 %v300_v3, %v252_v2 }
  0xa3   :  { %v340_v5 = vsub.f32 0.0, %v301_v4 }
  0xa4   :  { %v271_v6 = vpop.f32.mrf.mxu2 }
  0xa5   :  { %v356_v7 = vmul.f32 1.442695, %v340_v5  ;;  %v272_v8 = vadd.f32 %v927_v0, %v271_v6  ;;  %v320_v9 = vpop.f32.mrf.mxu3 }
  0xa6   :  { %v253_v10 = vpop.f32.mrf.mxu0 }
  0xa7   :  { %696 = vpow2.f32 %v356_v7  ;;  %v931_v11 = vadd.f32 %v320_v9, %v272_v8  ;;  %v254_v12 = vadd.f32 %v927_v0, %v253_v10  ;;  %v302_v13 = vpop.f32.mrf.mxu1 }
  0xa9   :  { %v348_v14 = vsub.f32 0.0, %v931_v11  ;;  %v303_v15 = vadd.f32 %v302_v13, %v254_v12 }
  0xab   :  { %v372_v16 = vmul.f32 1.442695, %v348_v14  ;;  %v341_v17 = vsub.f32 0.0, %v303_v15 }
  0xac   :  { %v273_v18 = vpop.f32.mrf.mxu2 }
  0xad   :  { %v697_v19 = vpop.eup %696  ;;  %v358_v20 = vmul.f32 1.442695, %v341_v17  ;;  %v274_v21 = vadd.f32 %v927_v0, %v273_v18  ;;  %v322_v22 = vpop.f32.mrf.mxu3  ;;  %698 = vpow2.f32 %v372_v16 }
  0xae   :  { %v256_v23 = vpop.f32.mrf.mxu0  ;;  %v388_v27 = vadd.f32 1.0, %v697_v19 }
  0xaf   :  { %700 = vpow2.f32 %v358_v20  ;;  %v323_v24 = vadd.f32 %v322_v22, %v274_v21  ;;  %v257_v25 = vadd.f32 %v927_v0, %v256_v23  ;;  %v305_v26 = vpop.f32.mrf.mxu1 }
  0xb0   :  { %702 = vrcp.f32 %v388_v27 }
  0xb1   :  { %v349_v28 = vsub.f32 0.0, %v323_v24  ;;  %v937_v29 = vadd.f32 %v305_v26, %v257_v25 }
  0xb3   :  { %v374_v30 = vmul.f32 1.442695, %v349_v28  ;;  %v342_v31 = vsub.f32 0.0, %v937_v29  ;;  %v699_v32 = vpop.eup %698 }
  0xb4   :  { %v276_v33 = vpop.f32.mrf.mxu2  ;;  %v396_v43 = vadd.f32 1.0, %v699_v32 }
  0xb5   :  { %v701_v34 = vpop.eup %700  ;;  %704 = vpow2.f32 %v374_v30  ;;  %v360_v35 = vmul.f32 1.442695, %v342_v31  ;;  %v277_v36 = vadd.f32 %v927_v0, %v276_v33  ;;  %v325_v37 = vpop.f32.mrf.mxu3 }
  0xb6   :  { %v389_v38 = vadd.f32 1.0, %v701_v34  ;;  %v258_v39 = vpop.f32.mrf.mxu0  ;;  %v703_v46 = vpop.eup %702 }
  0xb7   :  { %706 = vpow2.f32 %v360_v35  ;;  %v941_v40 = vadd.f32 %v325_v37, %v277_v36  ;;  %v259_v41 = vadd.f32 %v927_v0, %v258_v39  ;;  %v307_v42 = vpop.f32.mrf.mxu1  ;;  %v420_v57 = vmul.f32 %v703_v46, %v301_v4 }
  0xb8   :  { %708 = vrcp.f32 %v389_v38 }
  0xb9   :  { %v350_v44 = vsub.f32 0.0, %v941_v40  ;;  %v945_v45 = vadd.f32 %v307_v42, %v259_v41  ;;  %710 = vrcp.f32 %v396_v43 }
  0xbb   :  { %v705_v47 = vpop.eup %704  ;;  %v376_v48 = vmul.f32 1.442695, %v350_v44  ;;  %v343_v49 = vsub.f32 0.0, %v945_v45 }
  0xbc   :  { %v397_v50 = vadd.f32 1.0, %v705_v47  ;;  %v278_v51 = vpop.f32.mrf.mxu2 }
  0xbd   :  { %v707_v52 = vpop.eup %706  ;;  %712 = vpow2.f32 %v376_v48  ;;  %v362_v53 = vmul.f32 1.442695, %v343_v49  ;;  %v279_v54 = vadd.f32 %v927_v0, %v278_v51  ;;  %v327_v55 = vpop.f32.mrf.mxu3 }
  0xbe   :  { %v709_v56 = vpop.eup %708  ;;  %714 = vrcp.f32 %v397_v50  ;;  %v261_v58 = vpop.f32.mrf.mxu0  ;;  %v390_v63 = vadd.f32 1.0, %v707_v52 }
  0xbf   :  { %v421_v59 = vmul.f32 %v709_v56, %v303_v15  ;;  %716 = vpow2.f32 %v362_v53  ;;  %v949_v60 = vadd.f32 %v327_v55, %v279_v54  ;;  %v262_v61 = vadd.f32 %v927_v0, %v261_v58  ;;  %v310_v62 = vpop.f32.mrf.mxu1  ;;  %v711_v5 = vpop.eup %710 }
  0xc0   :  { %718 = vrcp.f32 %v390_v63  ;;  %v428_v12 = vmul.f32 %v711_v5, %v931_v11 }
  0xc1   :  { %v635_v1 = vpack.c.bf16 %v421_v59, %v420_v57  ;;  %v351_v2 = vsub.f32 0.0, %v949_v60  ;;  %v953_v3 = vadd.f32 %v310_v62, %v262_v61 }
  0xc3   :  { %v713_v6 = vpop.eup %712  ;;  %636 = vst [vmem:[%s1012_s3] sm:$0xff] %v635_v1   ;;  %v378_v4 = vmul.f32 1.442695, %v351_v2  ;;  %v344_v7 = vsub.f32 0.0, %v953_v3 }
  0xc4   :  { %v715_v8 = vpop.eup %714  ;;  %v281_v9 = vpop.f32.mrf.mxu2  ;;  %v398_v22 = vadd.f32 1.0, %v713_v6 }
  0xc5   :  { %v717_v10 = vpop.eup %716  ;;  %v429_v13 = vmul.f32 %v715_v8, %v323_v24  ;;  %720 = vpow2.f32 %v378_v4  ;;  %v282_v14 = vadd.f32 %v927_v0, %v281_v9  ;;  %v330_v15 = vpop.f32.mrf.mxu3  ;;  %v364_v19 = vmul.f32 1.442695, %v344_v7 }
  0xc6   :  { %v391_v16 = vadd.f32 1.0, %v717_v10  ;;  %v263_v17 = vpop.f32.mrf.mxu0  ;;  %v719_v24 = vpop.eup %718 }
  0xc7   :  { %v655_v18 = vpack.c.bf16 %v429_v13, %v428_v12  ;;  %v961_v20 = vadd.f32 %v330_v15, %v282_v14  ;;  %v312_v21 = vpop.f32.mrf.mxu1  ;;  %v264_v23 = vadd.f32 %v927_v0, %v263_v17  ;;  %v422_v35 = vmul.f32 %v719_v24, %v937_v29 }
  0xc8   :  { %722 = vrcp.f32 %v391_v16 }
  0xc9   :  { %675 = vst [vmem:[%s1012_s3 + $0x20] sm:$0xff] %v655_v18   ;;  %v352_v11 = vsub.f32 0.0, %v961_v20  ;;  %v968_v25 = vadd.f32 %v312_v21, %v264_v23  ;;  %724 = vpow2.f32 %v364_v19 }
  0xca   :  { %726 = vrcp.f32 %v398_v22 }
  0xcb   :  { %v721_v26 = vpop.eup %720  ;;  %v380_v27 = vmul.f32 1.442695, %v352_v11  ;;  %v345_v30 = vsub.f32 0.0, %v968_v25 }
  0xcc   :  { %v399_v28 = vadd.f32 1.0, %v721_v26  ;;  %v283_v31 = vpop.f32.mrf.mxu2 }
  0xcd   :  { %v284_v32 = vadd.f32 %v927_v0, %v283_v31  ;;  %v332_v33 = vpop.f32.mrf.mxu3  ;;  %v366_v36 = vmul.f32 1.442695, %v345_v30 }
  0xce   :  { %v723_v34 = vpop.eup %722  ;;  %728 = vrcp.f32 %v399_v28  ;;  %v266_v37 = vpop.f32.mrf.mxu0 }
  0xcf   :  { %v423_v38 = vmul.f32 %v723_v34, %v945_v45  ;;  %730 = vpow2.f32 %v380_v27  ;;  %v974_v39 = vadd.f32 %v332_v33, %v284_v32  ;;  %v267_v41 = vadd.f32 %v927_v0, %v266_v37  ;;  %v315_v42 = vpop.f32.mrf.mxu1  ;;  %v725_v43 = vpop.eup %724 }
  0xd0   :  { %732 = vpow2.f32 %v366_v36  ;;  %v727_v48 = vpop.eup %726  ;;  %v392_v50 = vadd.f32 1.0, %v725_v43 }
  0xd1   :  { %v640_v44 = vpack.c.bf16 %v423_v38, %v422_v35  ;;  %v353_v46 = vsub.f32 0.0, %v974_v39  ;;  %v978_v47 = vadd.f32 %v315_v42, %v267_v41  ;;  %v430_v53 = vmul.f32 %v727_v48, %v941_v40 }
  0xd3   :  { %672 = vst [vmem:[%s1012_s3 + $0x8] sm:$0xff] %v640_v44   ;;  %v382_v29 = vmul.f32 1.442695, %v353_v46  ;;  %v346_v45 = vsub.f32 0.0, %v978_v47 }
  0xd4   :  { %v729_v49 = vpop.eup %728  ;;  %v286_v51 = vpop.f32.mrf.mxu2 }
  0xd5   :  { %v731_v52 = vpop.eup %730  ;;  %v431_v54 = vmul.f32 %v729_v49, %v949_v60  ;;  %734 = vpow2.f32 %v382_v29  ;;  %v287_v55 = vadd.f32 %v927_v0, %v286_v51  ;;  %v335_v56 = vpop.f32.mrf.mxu3  ;;  %v368_v61 = vmul.f32 1.442695, %v346_v45 }
  0xd6   :  { %v268_v57 = vpop.f32.mrf.mxu0  ;;  %v733_v58 = vpop.eup %732  ;;  %736 = vrcp.f32 %v392_v50  ;;  %v400_v63 = vadd.f32 1.0, %v731_v52 }
  0xd7   :  { %v660_v59 = vpack.c.bf16 %v431_v54, %v430_v53  ;;  %v336_v62 = vadd.f32 %v335_v56, %v287_v55  ;;  %v393_v1 = vadd.f32 1.0, %v733_v58  ;;  %v269_v2 = vadd.f32 %v927_v0, %v268_v57  ;;  %v317_v60 = vpop.f32.mrf.mxu1 }
  0xd9   :  { %676 = vst [vmem:[%s1012_s3 + $0x28] sm:$0xff] %v660_v59   ;;  %v354_v40 = vsub.f32 0.0, %v336_v62  ;;  %738 = vrcp.f32 %v393_v1  ;;  %v318_v5 = vadd.f32 %v317_v60, %v269_v2 }
  0xda   :  { %740 = vpow2.f32 %v368_v61 }
  0xdb   :  { %v735_v6 = vpop.eup %734  ;;  %v384_v4 = vmul.f32 1.442695, %v354_v40  ;;  %742 = vrcp.f32 %v400_v63  ;;  %v347_v8 = vsub.f32 0.0, %v318_v5 }
  0xdc   :  { %v401_v7 = vadd.f32 1.0, %v735_v6  ;;  %v288_v9 = vpop.f32.mrf.mxu2  ;;  %v737_v12 = vpop.eup %736 }
  0xdd   :  { %v289_v10 = vadd.f32 %v927_v0, %v288_v9  ;;  %v370_v13 = vmul.f32 1.442695, %v347_v8  ;;  %v337_v14 = vpop.f32.mrf.mxu3  ;;  %v424_v18 = vmul.f32 %v737_v12, %v953_v3 }
  0xde   :  { %744 = vrcp.f32 %v401_v7 }
  0xdf   :  { %746 = vpow2.f32 %v384_v4  ;;  %v338_v15 = vadd.f32 %v337_v14, %v289_v10  ;;  %v739_v16 = vpop.eup %738 }
  0xe0   :  { %v741_v17 = vpop.eup %740  ;;  %v425_v19 = vmul.f32 %v739_v16, %v968_v25  ;;  %748 = vpow2.f32 %v370_v13 }
  0xe1   :  { %v355_v21 = vsub.f32 0.0, %v338_v15  ;;  %v743_v22 = vpop.eup %742  ;;  %v394_v26 = vadd.f32 1.0, %v741_v17 }
  0xe2   :  { %v645_v23 = vpack.c.bf16 %v425_v19, %v424_v18  ;;  %v432_v27 = vmul.f32 %v743_v22, %v961_v20 }
  0xe3   :  { %v386_v11 = vmul.f32 1.442695, %v355_v21 }
  0xe4   :  { %v745_v24 = vpop.eup %744  ;;  %673 = vst [vmem:[%s1012_s3 + $0x10] sm:$0xff] %v645_v23  }
  0xe5   :  { %v747_v0 = vpop.eup %746  ;;  %v433_v28 = vmul.f32 %v745_v24, %v974_v39  ;;  %750 = vpow2.f32 %v386_v11 }
  0xe6   :  { %v749_v3 = vpop.eup %748  ;;  %752 = vrcp.f32 %v394_v26  ;;  %v402_v25 = vadd.f32 1.0, %v747_v0 }
  0xe7   :  { %v665_v30 = vpack.c.bf16 %v433_v28, %v432_v27  ;;  %v395_v31 = vadd.f32 1.0, %v749_v3 }
  0xe9   :  { %677 = vst [vmem:[%s1012_s3 + $0x30] sm:$0xff] %v665_v30   ;;  %754 = vrcp.f32 %v395_v31 }
  0xea   :  { %756 = vrcp.f32 %v402_v25 }
  0xeb   :  { %v751_v32 = vpop.eup %750 }
  0xec   :  { %v403_v20 = vadd.f32 1.0, %v751_v32  ;;  %v753_v33 = vpop.eup %752 }
  0xed   :  { %v426_v35 = vmul.f32 %v753_v33, %v978_v47 }
  0xee   :  { %758 = vrcp.f32 %v403_v20 }
  0xef   :  { %v755_v34 = vpop.eup %754 }
  0xf0   :  { %v427_v36 = vmul.f32 %v755_v34, %v318_v5  ;;  %v757_v37 = vpop.eup %756 }
  0xf1   :  { %v434_v41 = vmul.f32 %v757_v37, %v336_v62 }
  0xf2   :  { %v650_v38 = vpack.c.bf16 %v427_v36, %v426_v35 }
  0xf4   :  { %v759_v39 = vpop.eup %758  ;;  %674 = vst [vmem:[%s1012_s3 + $0x18] sm:$0xff] %v650_v38  }
  0xf5   :  { %v435_v42 = vmul.f32 %v759_v39, %v338_v15 }
  0xf7   :  { %v670_v43 = vpack.c.bf16 %v435_v42, %v434_v41 }
  0xf9   :  { %678 = vst [vmem:[%s1012_s3 + $0x38] sm:$0xff] %v670_v43  }

// kernel: _lambda_.5
= control target key start
LH: loop header
LB: loop body
LE: loop exit
PB: predicated region body
PF: predicated region fallthrough
CT: control target
= control target key end

     0   :  { %s1169_s24 = smov 0   ;;  %s1171_s25 = smov 0   ;;  %s1339_s0 = inlined_call_operand.vmem [shape: bf16[2,16,384], index: 0, kind: input, shape index: {}]   ;;  %s1340_s1 = inlined_call_operand.vmem [shape: bf16[384,128], index: 1, kind: input, shape index: {}]   ;;  %s1341_s2 = inlined_call_operand.vmem [shape: f32[1,128], index: 2, kind: input, shape index: {}]   ;;  %s1342_s3 = inlined_call_operand.vmem [shape: bf16[128,128], index: 3, kind: input, shape index: {}]   ;;  %s1343_s4 = inlined_call_operand.vmem [shape: f32[1,128], index: 4, kind: input, shape index: {}]   ;;  %s1344_s5 = inlined_call_operand.vmem [shape: bf16[128,128], index: 5, kind: input, shape index: {}]   ;;  %s1345_s6 = inlined_call_operand.vmem [shape: f32[1,128], index: 6, kind: input, shape index: {}]   ;;  %s1346_s7 = inlined_call_operand.vmem [shape: f32[2,8,128], index: 7, kind: output, shape index: {}]  }
   0x1   :  { %s1173_s26 = smov 0  }
   0x2 LB: > { %s29_s27 = sadd.s32 1, %s1123_s25  ;;  %p849_p0 = scmp.ge.s32.totalorder %s1127_s26, 1  ;;  %s1127_s26 = sphi %s1173_s26, %s17_s26   ;;  %s1123_s25 = sphi %s1171_s25, %s1348_s25   ;;  %s1119_s24 = sphi %s1169_s24, %s1347_s24  }
   0x3   : > { %p31_p1 = scmp.ge.s32.totalorder %s29_s27, 2  ;;  %p257_p2 = scmp.lt.s32.totalorder %s1127_s26, 3 }
   0x5   : > { %s1350_s27 = smov (%p31_p1, %s29_s27), 0  ;;  %p258_p3 = pnand %p849_p0, %p257_p2 }
   0x6   : > { %p294_p4 = scmp.lt.s32.totalorder (!%p258_p3), %s1119_s24, 1 }
   0x7   : > { %261 = sbr.rel (%p258_p3) target bundleno = 500 (0x1f4), region = 48 }
   0xc   : > { %v1036_v0 = vld [vmem:[%s1340_s1 + $0x38] sm:$0xff]  ;;  %v1035_v3 = vld [vmem:[%s1340_s1 + $0x30] sm:$0xff]  ;;  %v1034_v6 = vld [vmem:[%s1340_s1 + $0x28] sm:$0xff]  ;;  %s1352_s24 = smov (!%p294_p4, %s1119_s24), 1 }
   0xd   : > { %v1044_v1 = vld [vmem:[%s1340_s1 + $0x78] sm:$0xff]  ;;  %529 = vmatpush.bf16.msra.mxu0 %v1036_v0  ;;  %v1043_v4 = vld [vmem:[%s1340_s1 + $0x70] sm:$0xff]  ;;  %v1042_v7 = vld [vmem:[%s1340_s1 + $0x68] sm:$0xff]  ;;  %s1069_s20 = smul.u32 24, %s1352_s24  ;;  %s851_s17 = sshll.u32 %s1352_s24, 3 }
   0xe   : > { %v1052_v2 = vld [vmem:[%s1340_s1 + $0xb8] sm:$0xff]  ;;  %543 = vmatpush.bf16.msra.mxu1 %v1044_v1  ;;  %v1051_v5 = vld [vmem:[%s1340_s1 + $0xb0] sm:$0xff]  ;;  %v1050_v8 = vld [vmem:[%s1340_s1 + $0xa8] sm:$0xff]  ;;  %s307_s22 = scalar_lea.vmem %s1346_s7, %s851_s17 }
   0xf   : > { %557 = vmatpush.bf16.msra.mxu2 %v1052_v2  ;;  %v1033_v9 = vld [vmem:[%s1340_s1 + $0x20] sm:$0xff]  ;;  %v1032_v12 = vld [vmem:[%s1340_s1 + $0x18] sm:$0xff]  ;;  %v1031_v15 = vld [vmem:[%s1340_s1 + $0x10] sm:$0xff]  ;;  %s302_s10 = scalar_lea.vmem %s1339_s0, %s1069_s20 }
  0x10   : > { %v1041_v10 = vld [vmem:[%s1340_s1 + $0x60] sm:$0xff]  ;;  %v1040_v13 = vld [vmem:[%s1340_s1 + $0x58] sm:$0xff]  ;;  %v1039_v16 = vld [vmem:[%s1340_s1 + $0x50] sm:$0xff] }
  0x11   : > { %530 = vmatpush.bf16.msra.mxu0 %v1035_v3  ;;  %v1049_v11 = vld [vmem:[%s1340_s1 + $0xa0] sm:$0xff]  ;;  %v1048_v14 = vld [vmem:[%s1340_s1 + $0x98] sm:$0xff]  ;;  %v1047_v17 = vld [vmem:[%s1340_s1 + $0x90] sm:$0xff] }
  0x12   : > { %544 = vmatpush.bf16.msra.mxu1 %v1043_v4  ;;  %v1030_v18 = vld [vmem:[%s1340_s1 + $0x8] sm:$0xff]  ;;  %v1029_v21 = vld [vmem:[%s1340_s1] sm:$0xff]  ;;  %v856_v26 = vld [vmem:[%s302_s10 + $0xc] sm:$0xf0] }
  0x13   : > { %558 = vmatpush.bf16.msra.mxu2 %v1051_v5  ;;  %v1038_v19 = vld [vmem:[%s1340_s1 + $0x48] sm:$0xff]  ;;  %v1037_v22 = vld [vmem:[%s1340_s1 + $0x40] sm:$0xff]  ;;  %v1028_v29 = vld [vmem:[%s302_s10 + $0x10] sm:$0xf0] }
  0x14   : > { %v1046_v20 = vld [vmem:[%s1340_s1 + $0x88] sm:$0xff]  ;;  %v854_v23 = vld [vmem:[%s302_s10] sm:$0xf]  ;;  %v1026_v25 = vld [vmem:[%s302_s10 + $0x4] sm:$0xf] }
  0x15   : > { %531 = vmatpush.bf16.msra.mxu0 %v1034_v6  ;;  %v1027_v24 = vld [vmem:[%s302_s10 + $0x8] sm:$0xf0]  ;;  %v1045_v27 = vld [vmem:[%s1340_s1 + $0x80] sm:$0xff]  ;;  %v862_v28 = vld [vmem:[%s302_s10 + $0x8] sm:$0xf]  ;;  %v859_v31 = vor.u32 %v1026_v25, %v856_v26 }
  0x16   : > { %545 = vmatpush.bf16.msra.mxu1 %v1042_v7  ;;  %v855_v30 = vor.u32 %v1027_v24, %v854_v23  ;;  %v863_v32 = vor.u32 %v1028_v29, %v862_v28  ;;  %v1060_v33 = vld [vmem:[%s1342_s3 + $0x38] sm:$0xff]  ;;  %v1094_v34 = vld [vmem:[%s1341_s2] ss:$0 sm:$0xff]  ;;  %v1059_v35 = vld [vmem:[%s1342_s3 + $0x30] sm:$0xff] }
  0x17   : > { %559 = vmatpush.bf16.msra.mxu2 %v1050_v8  ;;  %678 = vmatpush.bf16.msra.mxu3 %v1060_v33  ;;  %v1058_v38 = vld [vmem:[%s1342_s3 + $0x28] sm:$0xff]  ;;  %v1057_v41 = vld [vmem:[%s1342_s3 + $0x20] sm:$0xff]  ;;  %v1056_v45 = vld [vmem:[%s1342_s3 + $0x18] sm:$0xff] }
  0x18   : > { %v1055_v48 = vld [vmem:[%s1342_s3 + $0x10] sm:$0xff]  ;;  %v1054_v53 = vld [vmem:[%s1342_s3 + $0x8] sm:$0xff]  ;;  %v1053_v56 = vld [vmem:[%s1342_s3] sm:$0xff] }
  0x19   : > { %532 = vmatpush.bf16.msra.mxu0 %v1033_v9  ;;  %v1068_v60 = vld [vmem:[%s1344_s5 + $0x38] sm:$0xff]  ;;  %v1067_v62 = vld [vmem:[%s1344_s5 + $0x30] sm:$0xff]  ;;  %v1066_v0 = vld [vmem:[%s1344_s5 + $0x28] sm:$0xff] }
  0x1a   : > { %546 = vmatpush.bf16.msra.mxu1 %v1041_v10  ;;  %v1065_v2 = vld [vmem:[%s1344_s5 + $0x20] sm:$0xff]  ;;  %v1064_v7 = vld [vmem:[%s1344_s5 + $0x18] sm:$0xff]  ;;  %v1063_v10 = vld [vmem:[%s1344_s5 + $0x10] sm:$0xff] }
  0x1b   : > { %560 = vmatpush.bf16.msra.mxu2 %v1049_v11  ;;  %679 = vmatpush.bf16.msra.mxu3 %v1059_v35  ;;  %v1096_v25 = vld [vmem:[%s1345_s6] ss:$0 sm:$0xff] }
  0x1d   : > { %533 = vmatpush.bf16.msra.mxu0 %v1032_v12 }
  0x1e   : > { %547 = vmatpush.bf16.msra.mxu1 %v1040_v13 }
  0x1f   : > { %561 = vmatpush.bf16.msra.mxu2 %v1048_v14  ;;  %680 = vmatpush.bf16.msra.mxu3 %v1058_v38 }
  0x21   : > { %534 = vmatpush.bf16.msra.mxu0 %v1031_v15 }
  0x22   : > { %548 = vmatpush.bf16.msra.mxu1 %v1039_v16 }
  0x23   : > { %562 = vmatpush.bf16.msra.mxu2 %v1047_v17  ;;  %681 = vmatpush.bf16.msra.mxu3 %v1057_v41  ;;  %v1062_v17 = vld [vmem:[%s1344_s5 + $0x8] sm:$0xff] }
  0x25   : > { %535 = vmatpush.bf16.msra.mxu0 %v1030_v18  ;;  %v1061_v18 = vld [vmem:[%s1344_s5] sm:$0xff] }
  0x26   : > { %549 = vmatpush.bf16.msra.mxu1 %v1038_v19  ;;  %v1095_v19 = vld [vmem:[%s1343_s4] ss:$0 sm:$0xff] }
  0x27   : > { %563 = vmatpush.bf16.msra.mxu2 %v1046_v20  ;;  %682 = vmatpush.bf16.msra.mxu3 %v1056_v45 }
  0x29   : > { %536 = vmatpush.bf16.msra.mxu0 %v1029_v21 }
  0x2a   : > { %550 = vmatpush.bf16.msra.mxu1 %v1037_v22 }
  0x2b   : > { %564 = vmatpush.bf16.msra.mxu2 %v1045_v27  ;;  %683 = vmatpush.bf16.msra.mxu3 %v1055_v48 }
  0x2c   : > { %537 = vmatmul.bf16.vlgmr.msra.gmra.mxu0 %v855_v30 }
  0x2d   : > { %551 = vmatmul.bf16.vlgmr.msra.gmra.mxu1 %v859_v31  ;;  %761 = vmatpush.bf16.msrb.mxu0 %v1068_v60 }
  0x2e   : > { %565 = vmatmul.bf16.vlgmr.msra.gmra.mxu2 %v863_v32 }
  0x2f   : > { %684 = vmatpush.bf16.msra.mxu3 %v1054_v53 }
  0x31   : > { %762 = vmatpush.bf16.msrb.mxu0 %v1067_v62 }
  0x33   : > { %685 = vmatpush.bf16.msra.mxu3 %v1053_v56 }
  0x35   : > { %763 = vmatpush.bf16.msrb.mxu0 %v1066_v0 }
  0x39   : > { %764 = vmatpush.bf16.msrb.mxu0 %v1065_v2 }
  0x3d   : > { %765 = vmatpush.bf16.msrb.mxu0 %v1064_v7 }
  0x41   : > { %766 = vmatpush.bf16.msrb.mxu0 %v1063_v10 }
  0x45   : > { %767 = vmatpush.bf16.msrb.mxu0 %v1062_v17 }
  0x49   : > { %768 = vmatpush.bf16.msrb.mxu0 %v1061_v18 }
  0xa9   : > { %v538_v36 = vpop.f32.mrf.mxu0 }
  0xaa   : > { %v539_v37 = vadd.f32 %v1094_v34, %v538_v36  ;;  %v552_v39 = vpop.f32.mrf.mxu1 }
  0xac   : > { %v553_v40 = vadd.f32 %v552_v39, %v539_v37 }
  0xb1   : > { %v566_v42 = vpop.f32.mrf.mxu2  ;;  %v540_v44 = vpop.f32.mrf.mxu0 }
  0xb2   : > { %v567_v43 = vadd.f32 %v566_v42, %v553_v40  ;;  %v541_v47 = vadd.f32 %v1094_v34, %v540_v44  ;;  %v554_v50 = vpop.f32.mrf.mxu1 }
  0xb4   : > { %v571_v46 = vsub.f32 0.0, %v567_v43  ;;  %v555_v51 = vadd.f32 %v554_v50, %v541_v47 }
  0xb6   : > { %v573_v49 = vmul.f32 1.442695, %v571_v46 }
  0xb8   : > { %1097 = vpow2.f32 %v573_v49 }
  0xb9   : > { %v568_v52 = vpop.f32.mrf.mxu2 }
  0xba   : > { %v569_v54 = vadd.f32 %v568_v52, %v555_v51 }
  0xbc   : > { %v572_v55 = vsub.f32 0.0, %v569_v54 }
  0xbe   : > { %v575_v57 = vmul.f32 1.442695, %v572_v55  ;;  %v1098_v58 = vpop.eup %1097 }
  0xbf   : > { %v577_v59 = vadd.f32 1.0, %v1098_v58 }
  0xc0   : > { %1099 = vpow2.f32 %v575_v57 }
  0xc1   : > { %1101 = vrcp.f32 %v577_v59 }
  0xc6   : > { %v1100_v61 = vpop.eup %1099 }
  0xc7   : > { %v578_v63 = vadd.f32 1.0, %v1100_v61  ;;  %v1102_v1 = vpop.eup %1101 }
  0xc8   : > { %v581_v4 = vmul.f32 %v1102_v1, %v567_v43 }
  0xc9   : > { %1103 = vrcp.f32 %v578_v63 }
  0xcf   : > { %v1104_v3 = vpop.eup %1103 }
  0xd0   : > { %v582_v5 = vmul.f32 %v1104_v3, %v569_v54 }
  0xd2   : > { %v595_v6 = vadd.f32 %v582_v5, %v581_v4 }
  0xd4   : > { %v596_v8 = vrot.slane %v595_v6, 4 }
  0xd6   : > { %v597_v9 = vadd.f32 %v596_v8, %v595_v6 }
  0xd8   : > { %v598_v11 = vrot.slane %v597_v9, 2 }
  0xda   : > { %v599_v12 = vadd.f32 %v598_v11, %v597_v9 }
  0xdc   : > { %v600_v13 = vrot.slane %v599_v12, 1 }
  0xde   : > { %v601_v14 = vadd.f32 %v600_v13, %v599_v12 }
  0xe0   : > { %v608_v15 = vmul.f32 0.0625, %v601_v14 }
  0xe2   : > { %v609_v16 = vpack.c.bf16 %v608_v15, %v608_v15 }
  0xe4   : > { %686 = vmatmul.bf16.vlgmr.msra.gmra.mxu3 %v609_v16 }
 0x167   : > { %v687_v20 = vpop.f32.mrf.mxu3 }
 0x168   : > { %v688_v21 = vadd.f32 %v1095_v19, %v687_v20 }
 0x16a   : > { %v691_v22 = vmax.f32 %v688_v21, 0.0 }
 0x16c   : > { %v692_v23 = vpack.c.bf16 %v691_v22, %v691_v22 }
 0x16e   : > { %769 = vmatmul.bf16.vlgmr.msrb.gmra.mxu0 %v692_v23 }
 0x16f   : > { %v689_v24 = vpop.f32.mrf.mxu3 }
 0x1eb   : > { %v770_v26 = vpop.f32.mrf.mxu0 }
 0x1ec   : > { %v771_v27 = vadd.f32 %v1096_v25, %v770_v26 }
 0x1ee   : > { %774 = vst [vmem:[%s307_s22] sm:$0xff] %v771_v27 }
 0x1f3   : > { %v772_v28 = vpop.f32.mrf.mxu0 }
 0x1f4 PF: > { %s17_s26 = sadd.s32 1, %s1127_s26   ;;  %s1347_s24 = smov %s1123_s25 }
 0x1f5   : > { %p14_p5 = scmp.ge.s32.totalorder %s17_s26, 4   ;;  %s1348_s25 = smov %s1350_s27 }
 0x1f7   :  { %16 = sbr.rel (!%p14_p5) target bundleno = 2 (0x2), region = 86 }

</bundles_post_ra>
